<compile_context>
chip_gen: v6e
topology: v6e:2x2x1
jax: 0.10.0
libtpu: 0.0.40
codegen_flags: <defaults>
</compile_context>

<pallas_src>
import jax
import jax.numpy as jnp
from jax.experimental import pallas as pl
from jax.experimental.pallas import tpu as pltpu

INPUT_DIM = 16
HIDDEN_DIM = 32
NHEAD = 4            # head split is irrelevant for seq_len == 1 (attention reduces to V/out proj)
NUM_LAYERS = 2
FF_DIM = 2048        # PyTorch TransformerEncoderLayer default dim_feedforward
LN_EPS = 1e-5


def _layernorm(x, w, b, eps=LN_EPS):
    mu = jnp.mean(x, axis=-1, keepdims=True)
    xc = x - mu
    var = jnp.mean(xc * xc, axis=-1, keepdims=True)
    return xc * jax.lax.rsqrt(var + eps) * w + b


def _ae_kernel(x_ref,
               we_ref, be_ref,            # embedding folded with layer-0 (I + Wv@Wo) + residual
               wa_ref, ba_ref,            # layers 1..L-1 folded attention (I + Wv@Wo), bias
               ln1w_ref, ln1b_ref, ln2w_ref, ln2b_ref,
               w1_ref, b1_ref, w2_ref, b2_ref,
               wd_ref, bd_ref,
               out_ref):
    x = x_ref[...].astype(jnp.bfloat16)                              # (tb, in_dim)
    tb = x.shape[0]
    L = ln1w_ref.shape[0]
    D = wd_ref.shape[0]
    in_dim = wd_ref.shape[1]

    h = None
    for l in range(L):                                               # static unroll (L == 2)
        # --- self-attention block + residual, folded to a single matmul (exact for seq_len==1) ---
        if l == 0:
            pre = jnp.dot(x, we_ref[...],
                          preferred_element_type=jnp.float32) + be_ref[...]
        else:
            pre = jnp.dot(h.astype(jnp.bfloat16), wa_ref[l - 1],
                          preferred_element_type=jnp.float32) + ba_ref[l - 1]
        h = _layernorm(pre, ln1w_ref[l], ln1b_ref[l])

        # --- feed-forward block: bf16 MXU dots, f32 accumulation, single K=2048 dot for FF2 ---
        h_bf = h.astype(jnp.bfloat16)
        a = jnp.dot(h_bf, w1_ref[l], preferred_element_type=jnp.float32) + b1_ref[l]
        a = jnp.maximum(a, 0.0).astype(jnp.bfloat16)                 # relu (f32), then bf16 cast
        ff = jnp.dot(a, w2_ref[l], preferred_element_type=jnp.float32) + b2_ref[l]
        h = _layernorm(h + ff, ln2w_ref[l], ln2b_ref[l])

    dec = jnp.dot(h.astype(jnp.bfloat16), wd_ref[...],
                  preferred_element_type=jnp.float32) + bd_ref[...]

    # lane-dense packed output: [ decoded | encoded | zero pad ] -> one full-lane store
    pad_w = out_ref.shape[1] - in_dim - D
    if pad_w > 0:
        out_ref[...] = jnp.concatenate(
            [dec, h, jnp.zeros((tb, pad_w), jnp.float32)], axis=-1)
    else:
        out_ref[...] = jnp.concatenate([dec, h], axis=-1)


def _prepare_kernel_params(params):
    """Offline (host-side, once) folding + bf16 casts.

    Exact algebra:
      pre_LN1(h) = h + (h@Wv + bv)@Wo + bo = h @ (I + Wv@Wo) + (bv@Wo + bo) = h @ Wa' + ba'
      layer 0:   (x@We + be) @ Wa0' + ba0' = x @ (We@Wa0') + (be@Wa0' + ba0')
    Matmul weights cast to bf16 (f32 accumulation inside the kernel); biases / LN stay f32.
    """
    wv, bv, wo, bo = params["wv"], params["bv"], params["wo"], params["bo"]
    L, D = wo.shape[0], wo.shape[1]
    eye = jnp.eye(D, dtype=jnp.float32)
    wa_all = eye[None] + jnp.einsum("lij,ljk->lik", wv, wo)          # (L, D, D)  = I + Wv@Wo
    ba_all = jnp.einsum("lij,ljk->lik", bv, wo) + bo                 # (L, 1, D)

    we_f = params["we"] @ wa_all[0]                                  # (in_dim, D)
    be_f = params["be"] @ wa_all[0] + ba_all[0]                      # (1, D)
    if L > 1:
        wa, ba = wa_all[1:], ba_all[1:]                              # (L-1, D, D), (L-1, 1, D)
    else:                                                            # keep non-empty for BlockSpec
        wa, ba = jnp.zeros((1, D, D), jnp.float32), jnp.zeros((1, 1, D), jnp.float32)

    return dict(
        we=we_f.astype(jnp.bfloat16), be=be_f,
        wa=wa.astype(jnp.bfloat16), ba=ba,
        ln1w=params["ln1w"], ln1b=params["ln1b"],
        ln2w=params["ln2w"], ln2b=params["ln2b"],
        w1=params["w1"].astype(jnp.bfloat16), b1=params["b1"],
        w2=params["w2"].astype(jnp.bfloat16), b2=params["b2"],
        wd=params["wd"].astype(jnp.bfloat16), bd=params["bd"],
    )


def _pick_tiling(B, tb_max=512):
    """Batch tile + padded batch.  Small B -> one exact-size tile (no redundant compute).
    Large B -> tb up to tb_max with an EVEN grid so ('parallel',) splits across v7x's 2 TCs."""
    b8 = max(8, pl.cdiv(B, 8) * 8)                 # sublane-align
    if b8 <= tb_max:
        return b8, b8                              # single tile, single grid step
    grid = 2 * pl.cdiv(b8, 2 * tb_max)             # even number of tiles
    tb = pl.cdiv(pl.cdiv(b8, grid), 8) * 8
    return tb, grid * tb


def transformer_autoencoder(x, kp, *, tb_max=512):
    B, in_dim = x.shape
    D = kp["wd"].shape[0]
    L = kp["ln1w"].shape[0]
    La = kp["wa"].shape[0]
    FF = kp["w1"].shape[2]
    out_lanes = max(128, pl.cdiv(in_dim + D, 128) * 128)

    tb, b_pad = _pick_tiling(B, tb_max)
    if b_pad != B:
        # Padded rows are all-zero; LayerNorm of a constant row stays finite (rsqrt(eps)),
        # and those rows are sliced away below, so the padding is harmless.
        x = jnp.pad(x, ((0, b_pad - B), (0, 0)))

    full = lambda shape: pl.BlockSpec(shape, lambda i: (0,) * len(shape))

    in_specs = [
        pl.BlockSpec((tb, in_dim), lambda i: (i, 0)),          # x
        full((in_dim, D)), full((1, D)),                       # folded embed (+layer-0 attn)
        full((La, D, D)), full((La, 1, D)),                    # folded attn for layers 1..L-1
        full((L, 1, D)), full((L, 1, D)),                      # ln1 w, b
        full((L, 1, D)), full((L, 1, D)),                      # ln2 w, b
        full((L, D, FF)), full((L, 1, FF)),                    # w1 (bf16), b1
        full((L, FF, D)), full((L, 1, D)),                     # w2 (bf16), b2
        full((D, in_dim)), full((1, in_dim)),                  # wd (bf16), bd
    ]
    out_specs = pl.BlockSpec((tb, out_lanes), lambda i: (i, 0))
    out_shape = jax.ShapeDtypeStruct((b_pad, out_lanes), jnp.float32)

    fn = pl.pallas_call(
        _ae_kernel,
        out_shape=out_shape,
        grid_spec=pltpu.PrefetchScalarGridSpec(
            num_scalar_prefetch=0,
            grid=(b_pad // tb,),
            in_specs=in_specs,
            out_specs=out_specs,
        ),
        compiler_params=pltpu.CompilerParams(
            dimension_semantics=("parallel",),
            vmem_limit_bytes=32 * 1024 * 1024,
        ),
    )
    packed = fn(
        x,
        kp["we"], kp["be"], kp["wa"], kp["ba"],
        kp["ln1w"], kp["ln1b"], kp["ln2w"], kp["ln2b"],
        kp["w1"], kp["b1"], kp["w2"], kp["b2"],
        kp["wd"], kp["bd"],
    )
    decoded = packed[:B, :in_dim]
    encoded = packed[:B, in_dim:in_dim + D]
    return decoded, encoded


def make_autoencoder(params, *, tb_max=512):
    """Fold/cast params once (host side) and return a jitted apply(x) -> (decoded, encoded)."""
    kp = _prepare_kernel_params(params)
    return jax.jit(lambda x: transformer_autoencoder(x, kp, tb_max=tb_max))


def init_params(key, in_dim=INPUT_DIM, D=HIDDEN_DIM, L=NUM_LAYERS, FF=FF_DIM):
    """Deterministic synthetic params. All matmul weights stored as (in, out)."""
    ks = jax.random.split(key, 16)
    u = lambda k, shape, s=0.1: jax.random.uniform(k, shape, jnp.float32, -s, s)
    # full in_proj (3D, D) like PyTorch MultiheadAttention; only the V slice
    # participates because seq_len == 1 (softmax over one key is exactly 1).
    in_proj_w = u(ks[0], (L, 3 * D, D))
    in_proj_b = u(ks[1], (L, 3 * D))
    wv = jnp.transpose(in_proj_w[:, 2 * D:3 * D, :], (0, 2, 1))      # (L, D, D) = (in, out)
    bv = in_proj_b[:, 2 * D:3 * D].reshape(L, 1, D)
    return {
        "we": u(ks[2], (in_dim, D)), "be": u(ks[3], (1, D)),
        "wv": wv, "bv": bv,
        "wo": u(ks[4], (L, D, D)), "bo": u(ks[5], (L, 1, D)),
        "ln1w": jnp.ones((L, 1, D), jnp.float32), "ln1b": jnp.zeros((L, 1, D), jnp.float32),
        "ln2w": jnp.ones((L, 1, D), jnp.float32), "ln2b": jnp.zeros((L, 1, D), jnp.float32),
        "w1": u(ks[6], (L, D, FF)), "b1": u(ks[7], (L, 1, FF)),
        "w2": u(ks[8], (L, FF, D)), "b2": u(ks[9], (L, 1, D)),
        "wd": u(ks[10], (D, in_dim)), "bd": u(ks[11], (1, in_dim)),
    }


def reference(x, p):
    """Pure-JAX f32 reference of the original (unfused) math."""
    h = x @ p["we"] + p["be"]
    L = p["wv"].shape[0]
    for l in range(L):
        v = h @ p["wv"][l] + p["bv"][l]
        attn = v @ p["wo"][l] + p["bo"][l]
        h = _layernorm(h + attn, p["ln1w"][l], p["ln1b"][l])
        ff = jnp.maximum(h @ p["w1"][l] + p["b1"][l], 0.0) @ p["w2"][l] + p["b2"][l]
        h = _layernorm(h + ff, p["ln2w"][l], p["ln2b"][l])
    return h @ p["wd"] + p["bd"], h


if __name__ == "__main__":
    key = jax.random.PRNGKey(0)
    kx, kparam = jax.random.split(key)
    B = 8
    x = jax.random.normal(kx, (B, INPUT_DIM), jnp.float32)
    params = init_params(kparam)

    apply_fn = make_autoencoder(params)
    decoded, encoded = apply_fn(x)
    decoded = jax.block_until_ready(decoded)
    encoded = jax.block_until_ready(encoded)

    dec_ref, enc_ref = reference(x, params)
    assert decoded.shape == (B, INPUT_DIM) and encoded.shape == (B, HIDDEN_DIM)
    # bf16 matmul weights/activations (f32 accumulate) -> compare to f32 ref with loose tolerance
    assert jnp.allclose(decoded, dec_ref, atol=2e-2, rtol=2e-2)
    assert jnp.allclose(encoded, enc_ref, atol=2e-2, rtol=2e-2)
    print("KERNEL_OK")
</pallas_src>

<mosaic_0001>
module attributes {stable_mosaic.version = 11 : i64} {
  func.func @_ae_kernel(%arg0: i32, %arg1: memref<8x16xf32, #tpu.memory_space<vmem>>, %arg2: memref<16x32xbf16, #tpu.memory_space<vmem>>, %arg3: memref<1x32xf32, #tpu.memory_space<vmem>>, %arg4: memref<1x32x32xbf16, #tpu.memory_space<vmem>>, %arg5: memref<1x1x32xf32, #tpu.memory_space<vmem>>, %arg6: memref<2x1x32xf32, #tpu.memory_space<vmem>>, %arg7: memref<2x1x32xf32, #tpu.memory_space<vmem>>, %arg8: memref<2x1x32xf32, #tpu.memory_space<vmem>>, %arg9: memref<2x1x32xf32, #tpu.memory_space<vmem>>, %arg10: memref<2x32x2048xbf16, #tpu.memory_space<vmem>>, %arg11: memref<2x1x2048xf32, #tpu.memory_space<vmem>>, %arg12: memref<2x2048x32xbf16, #tpu.memory_space<vmem>>, %arg13: memref<2x1x32xf32, #tpu.memory_space<vmem>>, %arg14: memref<32x16xbf16, #tpu.memory_space<vmem>>, %arg15: memref<1x16xf32, #tpu.memory_space<vmem>>, %arg16: memref<8x128xf32, #tpu.memory_space<vmem>>) attributes {dimension_semantics = [#tpu.dimension_semantics<parallel>], iteration_bounds = array<i64: 1>, scalar_prefetch = 0 : i64, scratch_operands = 0 : i64, tpu.core_type = #tpu.core_type<tc>, window_params = [{transform_indices = @transform_0, window_bounds = array<i64: 8, 16>}, {pipeline_mode = #tpu.pipeline_mode<synchronous>, transform_indices = @transform_1, window_bounds = array<i64: 16, 32>}, {pipeline_mode = #tpu.pipeline_mode<synchronous>, transform_indices = @transform_2, window_bounds = array<i64: 1, 32>}, {pipeline_mode = #tpu.pipeline_mode<synchronous>, transform_indices = @transform_3, window_bounds = array<i64: 1, 32, 32>}, {pipeline_mode = #tpu.pipeline_mode<synchronous>, transform_indices = @transform_4, window_bounds = array<i64: 1, 1, 32>}, {pipeline_mode = #tpu.pipeline_mode<synchronous>, transform_indices = @transform_5, window_bounds = array<i64: 2, 1, 32>}, {pipeline_mode = #tpu.pipeline_mode<synchronous>, transform_indices = @transform_6, window_bounds = array<i64: 2, 1, 32>}, {pipeline_mode = #tpu.pipeline_mode<synchronous>, transform_indices = @transform_7, window_bounds = array<i64: 2, 1, 32>}, {pipeline_mode = #tpu.pipeline_mode<synchronous>, transform_indices = @transform_8, window_bounds = array<i64: 2, 1, 32>}, {pipeline_mode = #tpu.pipeline_mode<synchronous>, transform_indices = @transform_9, window_bounds = array<i64: 2, 32, 2048>}, {pipeline_mode = #tpu.pipeline_mode<synchronous>, transform_indices = @transform_10, window_bounds = array<i64: 2, 1, 2048>}, {pipeline_mode = #tpu.pipeline_mode<synchronous>, transform_indices = @transform_11, window_bounds = array<i64: 2, 2048, 32>}, {pipeline_mode = #tpu.pipeline_mode<synchronous>, transform_indices = @transform_12, window_bounds = array<i64: 2, 1, 32>}, {pipeline_mode = #tpu.pipeline_mode<synchronous>, transform_indices = @transform_13, window_bounds = array<i64: 32, 16>}, {pipeline_mode = #tpu.pipeline_mode<synchronous>, transform_indices = @transform_14, window_bounds = array<i64: 1, 16>}, {transform_indices = @transform_15, window_bounds = array<i64: 8, 128>}]} {
    %c0 = arith.constant 0 : index
    %c0_0 = arith.constant 0 : index
    %0 = vector.load %arg1[%c0, %c0_0] : memref<8x16xf32, #tpu.memory_space<vmem>>, vector<8x16xf32>
    %1 = arith.truncf %0 : vector<8x16xf32> to vector<8x16xbf16>
    %c0_1 = arith.constant 0 : index
    %c0_2 = arith.constant 0 : index
    %2 = vector.load %arg2[%c0_1, %c0_2] : memref<16x32xbf16, #tpu.memory_space<vmem>>, vector<16x32xbf16>
    %cst = arith.constant dense<0.000000e+00> : vector<8x32xf32>
    %3 = tpu.matmul %1, %2, %cst {dimension_numbers = #tpu.dot_dimension_numbers<[1], [0], [0], [1], [0, 0, 1, 1], [], []>} : vector<8x16xbf16>, vector<16x32xbf16>, vector<8x32xf32> -> vector<8x32xf32>
    %c0_3 = arith.constant 0 : index
    %c0_4 = arith.constant 0 : index
    %4 = vector.load %arg3[%c0_3, %c0_4] : memref<1x32xf32, #tpu.memory_space<vmem>>, vector<1x32xf32>
    %5 = vector.broadcast %4 : vector<1x32xf32> to vector<8x32xf32>
    %6 = arith.addf %3, %5 : vector<8x32xf32>
    %c0_5 = arith.constant 0 : index
    %c0_6 = arith.constant 0 : index
    %c0_7 = arith.constant 0 : index
    %7 = vector.load %arg6[%c0_5, %c0_6, %c0_7] : memref<2x1x32xf32, #tpu.memory_space<vmem>>, vector<1x1x32xf32>
    %8 = vector.shape_cast %7 : vector<1x1x32xf32> to vector<1x32xf32>
    %c0_8 = arith.constant 0 : index
    %c0_9 = arith.constant 0 : index
    %c0_10 = arith.constant 0 : index
    %9 = vector.load %arg7[%c0_8, %c0_9, %c0_10] : memref<2x1x32xf32, #tpu.memory_space<vmem>>, vector<1x1x32xf32>
    %10 = vector.shape_cast %9 : vector<1x1x32xf32> to vector<1x32xf32>
    %cst_11 = arith.constant dense<0.000000e+00> : vector<8xf32>
    %11 = vector.multi_reduction <add>, %6, %cst_11 [1] : vector<8x32xf32> to vector<8xf32>
    %12 = vector.shape_cast %11 : vector<8xf32> to vector<8x1xf32>
    %cst_12 = arith.constant 3.200000e+01 : f32
    %13 = vector.broadcast %cst_12 : f32 to vector<8x1xf32>
    %14 = arith.divf %12, %13 : vector<8x1xf32>
    %15 = vector.broadcast %14 : vector<8x1xf32> to vector<8x32xf32>
    %16 = arith.subf %6, %15 : vector<8x32xf32>
    %17 = arith.mulf %16, %16 : vector<8x32xf32>
    %cst_13 = arith.constant dense<0.000000e+00> : vector<8xf32>
    %18 = vector.multi_reduction <add>, %17, %cst_13 [1] : vector<8x32xf32> to vector<8xf32>
    %19 = vector.shape_cast %18 : vector<8xf32> to vector<8x1xf32>
    %cst_14 = arith.constant 3.200000e+01 : f32
    %20 = vector.broadcast %cst_14 : f32 to vector<8x1xf32>
    %21 = arith.divf %19, %20 : vector<8x1xf32>
    %cst_15 = arith.constant 9.99999974E-6 : f32
    %22 = vector.broadcast %cst_15 : f32 to vector<8x1xf32>
    %23 = arith.addf %21, %22 : vector<8x1xf32>
    %24 = math.rsqrt %23 : vector<8x1xf32>
    %25 = vector.broadcast %24 : vector<8x1xf32> to vector<8x32xf32>
    %26 = arith.mulf %16, %25 : vector<8x32xf32>
    %27 = vector.broadcast %8 : vector<1x32xf32> to vector<8x32xf32>
    %28 = arith.mulf %26, %27 : vector<8x32xf32>
    %29 = vector.broadcast %10 : vector<1x32xf32> to vector<8x32xf32>
    %30 = arith.addf %28, %29 : vector<8x32xf32>
    %31 = arith.truncf %30 : vector<8x32xf32> to vector<8x32xbf16>
    %c0_16 = arith.constant 0 : index
    %c0_17 = arith.constant 0 : index
    %c0_18 = arith.constant 0 : index
    %32 = vector.load %arg10[%c0_16, %c0_17, %c0_18] : memref<2x32x2048xbf16, #tpu.memory_space<vmem>>, vector<1x32x2048xbf16>
    %33 = vector.shape_cast %32 : vector<1x32x2048xbf16> to vector<32x2048xbf16>
    %cst_19 = arith.constant dense<0.000000e+00> : vector<8x2048xf32>
    %34 = tpu.matmul %31, %33, %cst_19 {dimension_numbers = #tpu.dot_dimension_numbers<[1], [0], [0], [1], [0, 0, 1, 1], [], []>} : vector<8x32xbf16>, vector<32x2048xbf16>, vector<8x2048xf32> -> vector<8x2048xf32>
    %c0_20 = arith.constant 0 : index
    %c0_21 = arith.constant 0 : index
    %c0_22 = arith.constant 0 : index
    %35 = vector.load %arg11[%c0_20, %c0_21, %c0_22] : memref<2x1x2048xf32, #tpu.memory_space<vmem>>, vector<1x1x2048xf32>
    %36 = vector.shape_cast %35 : vector<1x1x2048xf32> to vector<1x2048xf32>
    %37 = vector.broadcast %36 : vector<1x2048xf32> to vector<8x2048xf32>
    %38 = arith.addf %34, %37 : vector<8x2048xf32>
    %cst_23 = arith.constant 0.000000e+00 : f32
    %39 = vector.broadcast %cst_23 : f32 to vector<8x2048xf32>
    %40 = arith.maximumf %38, %39 : vector<8x2048xf32>
    %41 = arith.truncf %40 : vector<8x2048xf32> to vector<8x2048xbf16>
    %c0_24 = arith.constant 0 : index
    %c0_25 = arith.constant 0 : index
    %c0_26 = arith.constant 0 : index
    %42 = vector.load %arg12[%c0_24, %c0_25, %c0_26] : memref<2x2048x32xbf16, #tpu.memory_space<vmem>>, vector<1x2048x32xbf16>
    %43 = vector.shape_cast %42 : vector<1x2048x32xbf16> to vector<2048x32xbf16>
    %cst_27 = arith.constant dense<0.000000e+00> : vector<8x32xf32>
    %44 = tpu.matmul %41, %43, %cst_27 {dimension_numbers = #tpu.dot_dimension_numbers<[1], [0], [0], [1], [0, 0, 1, 1], [], []>} : vector<8x2048xbf16>, vector<2048x32xbf16>, vector<8x32xf32> -> vector<8x32xf32>
    %c0_28 = arith.constant 0 : index
    %c0_29 = arith.constant 0 : index
    %c0_30 = arith.constant 0 : index
    %45 = vector.load %arg13[%c0_28, %c0_29, %c0_30] : memref<2x1x32xf32, #tpu.memory_space<vmem>>, vector<1x1x32xf32>
    %46 = vector.shape_cast %45 : vector<1x1x32xf32> to vector<1x32xf32>
    %47 = vector.broadcast %46 : vector<1x32xf32> to vector<8x32xf32>
    %48 = arith.addf %44, %47 : vector<8x32xf32>
    %49 = arith.addf %30, %48 : vector<8x32xf32>
    %c0_31 = arith.constant 0 : index
    %c0_32 = arith.constant 0 : index
    %c0_33 = arith.constant 0 : index
    %50 = vector.load %arg8[%c0_31, %c0_32, %c0_33] : memref<2x1x32xf32, #tpu.memory_space<vmem>>, vector<1x1x32xf32>
    %51 = vector.shape_cast %50 : vector<1x1x32xf32> to vector<1x32xf32>
    %c0_34 = arith.constant 0 : index
    %c0_35 = arith.constant 0 : index
    %c0_36 = arith.constant 0 : index
    %52 = vector.load %arg9[%c0_34, %c0_35, %c0_36] : memref<2x1x32xf32, #tpu.memory_space<vmem>>, vector<1x1x32xf32>
    %53 = vector.shape_cast %52 : vector<1x1x32xf32> to vector<1x32xf32>
    %cst_37 = arith.constant dense<0.000000e+00> : vector<8xf32>
    %54 = vector.multi_reduction <add>, %49, %cst_37 [1] : vector<8x32xf32> to vector<8xf32>
    %55 = vector.shape_cast %54 : vector<8xf32> to vector<8x1xf32>
    %cst_38 = arith.constant 3.200000e+01 : f32
    %56 = vector.broadcast %cst_38 : f32 to vector<8x1xf32>
    %57 = arith.divf %55, %56 : vector<8x1xf32>
    %58 = vector.broadcast %57 : vector<8x1xf32> to vector<8x32xf32>
    %59 = arith.subf %49, %58 : vector<8x32xf32>
    %60 = arith.mulf %59, %59 : vector<8x32xf32>
    %cst_39 = arith.constant dense<0.000000e+00> : vector<8xf32>
    %61 = vector.multi_reduction <add>, %60, %cst_39 [1] : vector<8x32xf32> to vector<8xf32>
    %62 = vector.shape_cast %61 : vector<8xf32> to vector<8x1xf32>
    %cst_40 = arith.constant 3.200000e+01 : f32
    %63 = vector.broadcast %cst_40 : f32 to vector<8x1xf32>
    %64 = arith.divf %62, %63 : vector<8x1xf32>
    %cst_41 = arith.constant 9.99999974E-6 : f32
    %65 = vector.broadcast %cst_41 : f32 to vector<8x1xf32>
    %66 = arith.addf %64, %65 : vector<8x1xf32>
    %67 = math.rsqrt %66 : vector<8x1xf32>
    %68 = vector.broadcast %67 : vector<8x1xf32> to vector<8x32xf32>
    %69 = arith.mulf %59, %68 : vector<8x32xf32>
    %70 = vector.broadcast %51 : vector<1x32xf32> to vector<8x32xf32>
    %71 = arith.mulf %69, %70 : vector<8x32xf32>
    %72 = vector.broadcast %53 : vector<1x32xf32> to vector<8x32xf32>
    %73 = arith.addf %71, %72 : vector<8x32xf32>
    %74 = arith.truncf %73 : vector<8x32xf32> to vector<8x32xbf16>
    %c0_42 = arith.constant 0 : index
    %c0_43 = arith.constant 0 : index
    %c0_44 = arith.constant 0 : index
    %75 = vector.load %arg4[%c0_42, %c0_43, %c0_44] : memref<1x32x32xbf16, #tpu.memory_space<vmem>>, vector<1x32x32xbf16>
    %76 = vector.shape_cast %75 : vector<1x32x32xbf16> to vector<32x32xbf16>
    %cst_45 = arith.constant dense<0.000000e+00> : vector<8x32xf32>
    %77 = tpu.matmul %74, %76, %cst_45 {dimension_numbers = #tpu.dot_dimension_numbers<[1], [0], [0], [1], [0, 0, 1, 1], [], []>} : vector<8x32xbf16>, vector<32x32xbf16>, vector<8x32xf32> -> vector<8x32xf32>
    %c0_46 = arith.constant 0 : index
    %c0_47 = arith.constant 0 : index
    %c0_48 = arith.constant 0 : index
    %78 = vector.load %arg5[%c0_46, %c0_47, %c0_48] : memref<1x1x32xf32, #tpu.memory_space<vmem>>, vector<1x1x32xf32>
    %79 = vector.shape_cast %78 : vector<1x1x32xf32> to vector<1x32xf32>
    %80 = vector.broadcast %79 : vector<1x32xf32> to vector<8x32xf32>
    %81 = arith.addf %77, %80 : vector<8x32xf32>
    %c1 = arith.constant 1 : index
    %c0_49 = arith.constant 0 : index
    %c0_50 = arith.constant 0 : index
    %82 = vector.load %arg6[%c1, %c0_49, %c0_50] : memref<2x1x32xf32, #tpu.memory_space<vmem>>, vector<1x1x32xf32>
    %83 = vector.shape_cast %82 : vector<1x1x32xf32> to vector<1x32xf32>
    %c1_51 = arith.constant 1 : index
    %c0_52 = arith.constant 0 : index
    %c0_53 = arith.constant 0 : index
    %84 = vector.load %arg7[%c1_51, %c0_52, %c0_53] : memref<2x1x32xf32, #tpu.memory_space<vmem>>, vector<1x1x32xf32>
    %85 = vector.shape_cast %84 : vector<1x1x32xf32> to vector<1x32xf32>
    %cst_54 = arith.constant dense<0.000000e+00> : vector<8xf32>
    %86 = vector.multi_reduction <add>, %81, %cst_54 [1] : vector<8x32xf32> to vector<8xf32>
    %87 = vector.shape_cast %86 : vector<8xf32> to vector<8x1xf32>
    %cst_55 = arith.constant 3.200000e+01 : f32
    %88 = vector.broadcast %cst_55 : f32 to vector<8x1xf32>
    %89 = arith.divf %87, %88 : vector<8x1xf32>
    %90 = vector.broadcast %89 : vector<8x1xf32> to vector<8x32xf32>
    %91 = arith.subf %81, %90 : vector<8x32xf32>
    %92 = arith.mulf %91, %91 : vector<8x32xf32>
    %cst_56 = arith.constant dense<0.000000e+00> : vector<8xf32>
    %93 = vector.multi_reduction <add>, %92, %cst_56 [1] : vector<8x32xf32> to vector<8xf32>
    %94 = vector.shape_cast %93 : vector<8xf32> to vector<8x1xf32>
    %cst_57 = arith.constant 3.200000e+01 : f32
    %95 = vector.broadcast %cst_57 : f32 to vector<8x1xf32>
    %96 = arith.divf %94, %95 : vector<8x1xf32>
    %cst_58 = arith.constant 9.99999974E-6 : f32
    %97 = vector.broadcast %cst_58 : f32 to vector<8x1xf32>
    %98 = arith.addf %96, %97 : vector<8x1xf32>
    %99 = math.rsqrt %98 : vector<8x1xf32>
    %100 = vector.broadcast %99 : vector<8x1xf32> to vector<8x32xf32>
    %101 = arith.mulf %91, %100 : vector<8x32xf32>
    %102 = vector.broadcast %83 : vector<1x32xf32> to vector<8x32xf32>
    %103 = arith.mulf %101, %102 : vector<8x32xf32>
    %104 = vector.broadcast %85 : vector<1x32xf32> to vector<8x32xf32>
    %105 = arith.addf %103, %104 : vector<8x32xf32>
    %106 = arith.truncf %105 : vector<8x32xf32> to vector<8x32xbf16>
    %c1_59 = arith.constant 1 : index
    %c0_60 = arith.constant 0 : index
    %c0_61 = arith.constant 0 : index
    %107 = vector.load %arg10[%c1_59, %c0_60, %c0_61] : memref<2x32x2048xbf16, #tpu.memory_space<vmem>>, vector<1x32x2048xbf16>
    %108 = vector.shape_cast %107 : vector<1x32x2048xbf16> to vector<32x2048xbf16>
    %cst_62 = arith.constant dense<0.000000e+00> : vector<8x2048xf32>
    %109 = tpu.matmul %106, %108, %cst_62 {dimension_numbers = #tpu.dot_dimension_numbers<[1], [0], [0], [1], [0, 0, 1, 1], [], []>} : vector<8x32xbf16>, vector<32x2048xbf16>, vector<8x2048xf32> -> vector<8x2048xf32>
    %c1_63 = arith.constant 1 : index
    %c0_64 = arith.constant 0 : index
    %c0_65 = arith.constant 0 : index
    %110 = vector.load %arg11[%c1_63, %c0_64, %c0_65] : memref<2x1x2048xf32, #tpu.memory_space<vmem>>, vector<1x1x2048xf32>
    %111 = vector.shape_cast %110 : vector<1x1x2048xf32> to vector<1x2048xf32>
    %112 = vector.broadcast %111 : vector<1x2048xf32> to vector<8x2048xf32>
    %113 = arith.addf %109, %112 : vector<8x2048xf32>
    %cst_66 = arith.constant 0.000000e+00 : f32
    %114 = vector.broadcast %cst_66 : f32 to vector<8x2048xf32>
    %115 = arith.maximumf %113, %114 : vector<8x2048xf32>
    %116 = arith.truncf %115 : vector<8x2048xf32> to vector<8x2048xbf16>
    %c1_67 = arith.constant 1 : index
    %c0_68 = arith.constant 0 : index
    %c0_69 = arith.constant 0 : index
    %117 = vector.load %arg12[%c1_67, %c0_68, %c0_69] : memref<2x2048x32xbf16, #tpu.memory_space<vmem>>, vector<1x2048x32xbf16>
    %118 = vector.shape_cast %117 : vector<1x2048x32xbf16> to vector<2048x32xbf16>
    %cst_70 = arith.constant dense<0.000000e+00> : vector<8x32xf32>
    %119 = tpu.matmul %116, %118, %cst_70 {dimension_numbers = #tpu.dot_dimension_numbers<[1], [0], [0], [1], [0, 0, 1, 1], [], []>} : vector<8x2048xbf16>, vector<2048x32xbf16>, vector<8x32xf32> -> vector<8x32xf32>
    %c1_71 = arith.constant 1 : index
    %c0_72 = arith.constant 0 : index
    %c0_73 = arith.constant 0 : index
    %120 = vector.load %arg13[%c1_71, %c0_72, %c0_73] : memref<2x1x32xf32, #tpu.memory_space<vmem>>, vector<1x1x32xf32>
    %121 = vector.shape_cast %120 : vector<1x1x32xf32> to vector<1x32xf32>
    %122 = vector.broadcast %121 : vector<1x32xf32> to vector<8x32xf32>
    %123 = arith.addf %119, %122 : vector<8x32xf32>
    %124 = arith.addf %105, %123 : vector<8x32xf32>
    %c1_74 = arith.constant 1 : index
    %c0_75 = arith.constant 0 : index
    %c0_76 = arith.constant 0 : index
    %125 = vector.load %arg8[%c1_74, %c0_75, %c0_76] : memref<2x1x32xf32, #tpu.memory_space<vmem>>, vector<1x1x32xf32>
    %126 = vector.shape_cast %125 : vector<1x1x32xf32> to vector<1x32xf32>
    %c1_77 = arith.constant 1 : index
    %c0_78 = arith.constant 0 : index
    %c0_79 = arith.constant 0 : index
    %127 = vector.load %arg9[%c1_77, %c0_78, %c0_79] : memref<2x1x32xf32, #tpu.memory_space<vmem>>, vector<1x1x32xf32>
    %128 = vector.shape_cast %127 : vector<1x1x32xf32> to vector<1x32xf32>
    %cst_80 = arith.constant dense<0.000000e+00> : vector<8xf32>
    %129 = vector.multi_reduction <add>, %124, %cst_80 [1] : vector<8x32xf32> to vector<8xf32>
    %130 = vector.shape_cast %129 : vector<8xf32> to vector<8x1xf32>
    %cst_81 = arith.constant 3.200000e+01 : f32
    %131 = vector.broadcast %cst_81 : f32 to vector<8x1xf32>
    %132 = arith.divf %130, %131 : vector<8x1xf32>
    %133 = vector.broadcast %132 : vector<8x1xf32> to vector<8x32xf32>
    %134 = arith.subf %124, %133 : vector<8x32xf32>
    %135 = arith.mulf %134, %134 : vector<8x32xf32>
    %cst_82 = arith.constant dense<0.000000e+00> : vector<8xf32>
    %136 = vector.multi_reduction <add>, %135, %cst_82 [1] : vector<8x32xf32> to vector<8xf32>
    %137 = vector.shape_cast %136 : vector<8xf32> to vector<8x1xf32>
    %cst_83 = arith.constant 3.200000e+01 : f32
    %138 = vector.broadcast %cst_83 : f32 to vector<8x1xf32>
    %139 = arith.divf %137, %138 : vector<8x1xf32>
    %cst_84 = arith.constant 9.99999974E-6 : f32
    %140 = vector.broadcast %cst_84 : f32 to vector<8x1xf32>
    %141 = arith.addf %139, %140 : vector<8x1xf32>
    %142 = math.rsqrt %141 : vector<8x1xf32>
    %143 = vector.broadcast %142 : vector<8x1xf32> to vector<8x32xf32>
    %144 = arith.mulf %134, %143 : vector<8x32xf32>
    %145 = vector.broadcast %126 : vector<1x32xf32> to vector<8x32xf32>
    %146 = arith.mulf %144, %145 : vector<8x32xf32>
    %147 = vector.broadcast %128 : vector<1x32xf32> to vector<8x32xf32>
    %148 = arith.addf %146, %147 : vector<8x32xf32>
    %149 = arith.truncf %148 : vector<8x32xf32> to vector<8x32xbf16>
    %c0_85 = arith.constant 0 : index
    %c0_86 = arith.constant 0 : index
    %150 = vector.load %arg14[%c0_85, %c0_86] : memref<32x16xbf16, #tpu.memory_space<vmem>>, vector<32x16xbf16>
    %cst_87 = arith.constant dense<0.000000e+00> : vector<8x16xf32>
    %151 = tpu.matmul %149, %150, %cst_87 {dimension_numbers = #tpu.dot_dimension_numbers<[1], [0], [0], [1], [0, 0, 1, 1], [], []>} : vector<8x32xbf16>, vector<32x16xbf16>, vector<8x16xf32> -> vector<8x16xf32>
    %c0_88 = arith.constant 0 : index
    %c0_89 = arith.constant 0 : index
    %152 = vector.load %arg15[%c0_88, %c0_89] : memref<1x16xf32, #tpu.memory_space<vmem>>, vector<1x16xf32>
    %153 = vector.broadcast %152 : vector<1x16xf32> to vector<8x16xf32>
    %154 = arith.addf %151, %153 : vector<8x16xf32>
    %cst_90 = arith.constant 0.000000e+00 : f32
    %155 = vector.broadcast %cst_90 : f32 to vector<8x80xf32>
    %156 = tpu.concatenate %154, %148, %155 in 1 : vector<8x16xf32>, vector<8x32xf32>, vector<8x80xf32> -> vector<8x128xf32>
    %c0_91 = arith.constant 0 : index
    %c0_92 = arith.constant 0 : index
    %157 = vector.load %arg16[%c0_91, %c0_92] : memref<8x128xf32, #tpu.memory_space<vmem>>, vector<8x128xf32>
    tpu.vector_store %arg16[%c0_91, %c0_92], %156 {strides = array<i32>} : memref<8x128xf32, #tpu.memory_space<vmem>>, vector<8x128xf32>,
    return
  }
  func.func @transform_0(%arg0: i32) -> (i32, i32) {
    %c0_i32 = arith.constant 0 : i32
    %c0_i32_0 = arith.constant 0 : i32
    return %arg0, %c0_i32 : i32, i32
  }
  func.func @transform_1(%arg0: i32) -> (i32, i32) {
    %c0_i32 = arith.constant 0 : i32
    %c0_i32_0 = arith.constant 0 : i32
    %c0_i32_1 = arith.constant 0 : i32
    return %c0_i32, %c0_i32_0 : i32, i32
  }
  func.func @transform_2(%arg0: i32) -> (i32, i32) {
    %c0_i32 = arith.constant 0 : i32
    %c0_i32_0 = arith.constant 0 : i32
    %c0_i32_1 = arith.constant 0 : i32
    return %c0_i32, %c0_i32_0 : i32, i32
  }
  func.func @transform_3(%arg0: i32) -> (i32, i32, i32) {
    %c0_i32 = arith.constant 0 : i32
    %c0_i32_0 = arith.constant 0 : i32
    %c0_i32_1 = arith.constant 0 : i32
    %c0_i32_2 = arith.constant 0 : i32
    return %c0_i32, %c0_i32_0, %c0_i32_1 : i32, i32, i32
  }
  func.func @transform_4(%arg0: i32) -> (i32, i32, i32) {
    %c0_i32 = arith.constant 0 : i32
    %c0_i32_0 = arith.constant 0 : i32
    %c0_i32_1 = arith.constant 0 : i32
    %c0_i32_2 = arith.constant 0 : i32
    return %c0_i32, %c0_i32_0, %c0_i32_1 : i32, i32, i32
  }
  func.func @transform_5(%arg0: i32) -> (i32, i32, i32) {
    %c0_i32 = arith.constant 0 : i32
    %c0_i32_0 = arith.constant 0 : i32
    %c0_i32_1 = arith.constant 0 : i32
    %c0_i32_2 = arith.constant 0 : i32
    return %c0_i32, %c0_i32_0, %c0_i32_1 : i32, i32, i32
  }
  func.func @transform_6(%arg0: i32) -> (i32, i32, i32) {
    %c0_i32 = arith.constant 0 : i32
    %c0_i32_0 = arith.constant 0 : i32
    %c0_i32_1 = arith.constant 0 : i32
    %c0_i32_2 = arith.constant 0 : i32
    return %c0_i32, %c0_i32_0, %c0_i32_1 : i32, i32, i32
  }
  func.func @transform_7(%arg0: i32) -> (i32, i32, i32) {
    %c0_i32 = arith.constant 0 : i32
    %c0_i32_0 = arith.constant 0 : i32
    %c0_i32_1 = arith.constant 0 : i32
    %c0_i32_2 = arith.constant 0 : i32
    return %c0_i32, %c0_i32_0, %c0_i32_1 : i32, i32, i32
  }
  func.func @transform_8(%arg0: i32) -> (i32, i32, i32) {
    %c0_i32 = arith.constant 0 : i32
    %c0_i32_0 = arith.constant 0 : i32
    %c0_i32_1 = arith.constant 0 : i32
    %c0_i32_2 = arith.constant 0 : i32
    return %c0_i32, %c0_i32_0, %c0_i32_1 : i32, i32, i32
  }
  func.func @transform_9(%arg0: i32) -> (i32, i32, i32) {
    %c0_i32 = arith.constant 0 : i32
    %c0_i32_0 = arith.constant 0 : i32
    %c0_i32_1 = arith.constant 0 : i32
    %c0_i32_2 = arith.constant 0 : i32
    return %c0_i32, %c0_i32_0, %c0_i32_1 : i32, i32, i32
  }
  func.func @transform_10(%arg0: i32) -> (i32, i32, i32) {
    %c0_i32 = arith.constant 0 : i32
    %c0_i32_0 = arith.constant 0 : i32
    %c0_i32_1 = arith.constant 0 : i32
    %c0_i32_2 = arith.constant 0 : i32
    return %c0_i32, %c0_i32_0, %c0_i32_1 : i32, i32, i32
  }
  func.func @transform_11(%arg0: i32) -> (i32, i32, i32) {
    %c0_i32 = arith.constant 0 : i32
    %c0_i32_0 = arith.constant 0 : i32
    %c0_i32_1 = arith.constant 0 : i32
    %c0_i32_2 = arith.constant 0 : i32
    return %c0_i32, %c0_i32_0, %c0_i32_1 : i32, i32, i32
  }
  func.func @transform_12(%arg0: i32) -> (i32, i32, i32) {
    %c0_i32 = arith.constant 0 : i32
    %c0_i32_0 = arith.constant 0 : i32
    %c0_i32_1 = arith.constant 0 : i32
    %c0_i32_2 = arith.constant 0 : i32
    return %c0_i32, %c0_i32_0, %c0_i32_1 : i32, i32, i32
  }
  func.func @transform_13(%arg0: i32) -> (i32, i32) {
    %c0_i32 = arith.constant 0 : i32
    %c0_i32_0 = arith.constant 0 : i32
    %c0_i32_1 = arith.constant 0 : i32
    return %c0_i32, %c0_i32_0 : i32, i32
  }
  func.func @transform_14(%arg0: i32) -> (i32, i32) {
    %c0_i32 = arith.constant 0 : i32
    %c0_i32_0 = arith.constant 0 : i32
    %c0_i32_1 = arith.constant 0 : i32
    return %c0_i32, %c0_i32_0 : i32, i32
  }
  func.func @transform_15(%arg0: i32) -> (i32, i32) {
    %c0_i32 = arith.constant 0 : i32
    %c0_i32_0 = arith.constant 0 : i32
    return %arg0, %c0_i32 : i32, i32
  }
}

</mosaic_0001>

<bundles_post_ra>
// kernel: _lambda_.1
= control target key start
LH: loop header
LB: loop body
LE: loop exit
PB: predicated region body
PF: predicated region fallthrough
CT: control target
= control target key end

     0   :  { %20 = vsyncpa [#allocation3], 0  ;;  %s6031_s0 = inlined_call_operand.hbm [shape: f32[8,16], index: 0, kind: input, shape index: {}]   ;;  %s6032_s1 = inlined_call_operand.vmem [shape: bf16[16,32], index: 1, kind: input, shape index: {}]   ;;  %s6033_s2 = inlined_call_operand.hbm [shape: f32[1,32], index: 2, kind: input, shape index: {}]   ;;  %s6034_s3 = inlined_call_operand.hbm [shape: bf16[1,32,32], index: 3, kind: input, shape index: {}]   ;;  %s6035_s4 = inlined_call_operand.hbm [shape: f32[1,1,32], index: 4, kind: input, shape index: {}]   ;;  %s6036_s5 = inlined_call_operand.vmem [shape: f32[2,1,32], index: 5, kind: input, shape index: {}, may-alias: {5,7}]   ;;  %s6037_s6 = inlined_call_operand.vmem [shape: f32[2,1,32], index: 6, kind: input, shape index: {}, may-alias: {6,8}]   ;;  %s6038_s7 = inlined_call_operand.vmem [shape: f32[2,1,32], index: 7, kind: input, shape index: {}, may-alias: {5,7}]   ;;  %s6039_s8 = inlined_call_operand.vmem [shape: f32[2,1,32], index: 8, kind: input, shape index: {}, may-alias: {6,8}]   ;;  %s6040_s9 = inlined_call_operand.hbm [shape: bf16[2,32,2048], index: 9, kind: input, shape index: {}]   ;;  %s6041_s10 = inlined_call_operand.hbm [shape: f32[2,1,2048], index: 10, kind: input, shape index: {}]   ;;  %s6042_s11 = inlined_call_operand.hbm [shape: bf16[2,2048,32], index: 11, kind: input, shape index: {}]   ;;  %s6043_s12 = inlined_call_operand.vmem [shape: f32[2,1,32], index: 12, kind: input, shape index: {}]   ;;  %s6044_s13 = inlined_call_operand.vmem [shape: bf16[32,16], index: 13, kind: input, shape index: {}]   ;;  %s6045_s14 = inlined_call_operand.vmem [shape: f32[1,16], index: 14, kind: input, shape index: {}]   ;;  %s6046_s15 = inlined_call_operand.vmem [shape: f32[8,128], index: 15, kind: output, shape index: {}]  }
   0x1   :  { %21 = vsyncpa [#allocation5], 0 }
   0x2   :  { %22 = vsyncpa [#allocation8], 0 }
   0x3   :  { %23 = vsyncpa [#allocation11], 0  ;;  %s5637_s18 = smov [#allocation4]   ;;  %s5638_s20 = smov [#allocation7]  }
   0x4   :  { %s42_s19 = sshll.u32 %s5637_s18, 4  ;;  %s64_s21 = sshll.u32 %s5638_s20, 4  ;;  %s43_s19 = int_to_ptr.vmem [resolvable:$true] %s42_s19  ;;  %s65_s21 = int_to_ptr.vmem [resolvable:$true] %s64_s21 }
   0x5   :  { %s5497_s22 = scalar_lea.vmem %s43_s19, 16  ;;  %s5501_s23 = scalar_lea.vmem %s43_s19, 32 }
   0x6   :  { %p5498_p0 = scmp.ne.s32.totalorder %s43_s19, %s5497_s22  ;;  %p5502_p1 = scmp.lt.s32.totalorder %s43_s19, %s43_s19 }
   0x7   :  { %p5503_p2 = scmp.lt.s32.totalorder %s5501_s23, %s5497_s22 }
   0x9   :  { %p5504_p3 = por %p5503_p2, %p5502_p1 }
   0xb   :  { %p5505_p4 = pnand %p5504_p3, %p5498_p0 }
   0xd   :  { %5508 = shalt.err (!%p5505_p4)
}
   0xe   :  { %45 = dma.hbm_to_vmem [thread:$0]  %s6033_s2, 16, %s43_s19, [#allocation5]  }
   0xf   :  { %s5517_s26 = scalar_lea.vmem %s65_s21, 16  ;;  %s5521_s27 = scalar_lea.vmem %s65_s21, 32 }
  0x10   :  { %p5518_p5 = scmp.ne.s32.totalorder %s65_s21, %s5517_s26  ;;  %p5522_p6 = scmp.lt.s32.totalorder %s65_s21, %s65_s21 }
  0x11   :  { %p5523_p7 = scmp.lt.s32.totalorder %s5521_s27, %s5517_s26 }
  0x13   :  { %p5524_p8 = por %p5523_p7, %p5522_p6 }
  0x15   :  { %p5525_p9 = pnand %p5524_p8, %p5518_p5 }
  0x17   :  { %5528 = shalt.err (!%p5525_p9)
}
  0x18   :  { %67 = dma.hbm_to_vmem [thread:$0]  %s6035_s4, 16, %s65_s21, [#allocation8]  }
  0x19   :  { %s5639_s30 = smov [#allocation10]  }
  0x1a   :  { %s93_s16 = sshll.u32 %s5639_s30, 4  ;;  %s94_s16 = int_to_ptr.vmem [resolvable:$true] %s93_s16 }
  0x1b   :  { %s5537_s17 = scalar_lea.vmem %s94_s16, 512  ;;  %p5542_p11 = scmp.lt.s32.totalorder %s94_s16, %s94_s16 }
  0x1c   :  { %p5538_p10 = scmp.ne.s32.totalorder %s94_s16, %s5537_s17  ;;  %p5543_p12 = scmp.lt.s32.totalorder %s5537_s17, %s5537_s17 }
  0x1e   :  { %p5544_p13 = por %p5543_p12, %p5542_p11 }
  0x20   :  { %p5545_p0 = pnand %p5544_p13, %p5538_p10 }
  0x22   :  { %5548 = shalt.err (!%p5545_p0)
}
  0x23   :  { %s5640_s2 = smov 256   ;;  %s5641_s18 = smov 16  }
  0x24   :  { %99 = dma.hbm_to_vmem [thread:$0]  %s6041_s10, 512, %s94_s16, [#allocation11], %s5640_s2, %s5640_s2, %s5641_s18  }
  0x25   :  { %s5642_s22 = smov [#allocation2]   ;;  %s5643_s4 = smov [#allocation6]  }
  0x26   :  { %s30_s23 = sshll.u32 %s5642_s22, 4  ;;  %s51_s21 = sshll.u32 %s5643_s4, 4  ;;  %s31_s23 = int_to_ptr.vmem [resolvable:$true] %s30_s23  ;;  %s52_s21 = int_to_ptr.vmem [resolvable:$true] %s51_s21 }
  0x27   :  { %s5557_s24 = scalar_lea.vmem %s31_s23, 128  ;;  %p5562_p2 = scmp.lt.s32.totalorder %s31_s23, %s31_s23 }
  0x28   :  { %p5558_p1 = scmp.ne.s32.totalorder %s31_s23, %s5557_s24  ;;  %p5563_p3 = scmp.lt.s32.totalorder %s5557_s24, %s5557_s24 }
  0x2a   :  { %p5564_p4 = por %p5563_p3, %p5562_p2 }
  0x2c   :  { %p5565_p5 = pnand %p5564_p4, %p5558_p1 }
  0x2e   :  { %5568 = shalt.err (!%p5565_p5)
}
  0x2f   :  { %33 = dma.hbm_to_vmem [thread:$0]  %s6031_s0, 128, %s31_s23, [#allocation3]  }
  0x30   :  { %s5577_s27 = scalar_lea.vmem %s52_s21, 256  ;;  %p5582_p7 = scmp.lt.s32.totalorder %s52_s21, %s52_s21 }
  0x31   :  { %p5578_p6 = scmp.ne.s32.totalorder %s52_s21, %s5577_s27  ;;  %p5583_p8 = scmp.lt.s32.totalorder %s5577_s27, %s5577_s27 }
  0x33   :  { %p5584_p9 = por %p5583_p8, %p5582_p7 }
  0x35   :  { %p5585_p10 = pnand %p5584_p9, %p5578_p6 }
  0x37   :  { %5588 = shalt.err (!%p5585_p10)
}
  0x38   :  { %s5644_s10 = smov 64   ;;  %s5645_s28 = smov 4  }
  0x39   :  { %57 = dma.hbm_to_vmem [thread:$0]  %s6034_s3, 256, %s52_s21, [#allocation5], %s5644_s10, %s5644_s10, %s5645_s28  }
  0x3a   :  { %s5646_s16 = smov [#allocation9]  }
  0x3b   :  { %s81_s17 = sshll.u32 %s5646_s16, 4  ;;  %s82_s17 = int_to_ptr.vmem [resolvable:$true] %s81_s17 }
  0x3c   :  { %s5597_s2 = scalar_lea.vmem %s82_s17, 8192  ;;  %p5602_p12 = scmp.lt.s32.totalorder %s82_s17, %s82_s17 }
  0x3d   :  { %p5598_p11 = scmp.ne.s32.totalorder %s82_s17, %s5597_s2  ;;  %p5603_p13 = scmp.lt.s32.totalorder %s5597_s2, %s5597_s2 }
  0x3f   :  { %p5604_p0 = por %p5603_p13, %p5602_p12 }
  0x41   :  { %p5605_p1 = pnand %p5604_p0, %p5598_p11 }
  0x43   :  { %5608 = shalt.err (!%p5605_p1)
}
  0x44   :  { %s5647_s0 = smov 1024   ;;  %s5648_s22 = smov [#allocation12]  }
  0x45   :  { %87 = dma.hbm_to_vmem [thread:$0]  %s6040_s9, 8192, %s82_s17, [#allocation8], %s5647_s0, %s5647_s0, %s5644_s10  }
  0x46   :  { %s105_s23 = sshll.u32 %s5648_s22, 4  ;;  %s106_s23 = int_to_ptr.vmem [resolvable:$true] %s105_s23 }
  0x47   :  { %s5617_s4 = scalar_lea.vmem %s106_s23, 32768  ;;  %p5622_p3 = scmp.lt.s32.totalorder %s106_s23, %s106_s23 }
  0x48   :  { %p5618_p2 = scmp.ne.s32.totalorder %s106_s23, %s5617_s4  ;;  %p5623_p4 = scmp.lt.s32.totalorder %s5617_s4, %s5617_s4 }
  0x4a   :  { %p5624_p5 = por %p5623_p4, %p5622_p3 }
  0x4c   :  { %p5625_p6 = pnand %p5624_p5, %p5618_p2 }
  0x4e   :  { %5628 = shalt.err (!%p5625_p6)
}
  0x4f   :  { %111 = dma.hbm_to_vmem [thread:$0]  %s6042_s11, 32768, %s106_s23, [#allocation11], %s5644_s10, %s5644_s10, %s5645_s28  }
  0x50   :  { %5629 = dma.done.wait [#allocation3], 128  }
  0x51   :  { %5630 = vsyncadd [#allocation3], 4294967168 }
  0x52   :  { %5631 = dma.done.wait [#allocation5], 272  }
  0x53   :  { %5632 = vsyncadd [#allocation5], 4294967024 }
  0x54   :  { %5633 = dma.done.wait [#allocation8], 8208  }
  0x55   :  { %5634 = vsyncadd [#allocation8], 4294959088 }
  0x56   :  { %5635 = dma.done.wait [#allocation11], 33280  }
  0x57   :  { %5636 = vsyncadd [#allocation11], 4294934016  ;;  %v5649_v0 = vmov 0.0   ;;  %vm5650_vm0 = vmmov 0   ;;  %v5220_v1 = vld [vmem:[%s6032_s1] sm:$0xff]   ;;  %vm157_vm1 = vcmask 130048  }
  0x58   :  { %5183 = vmatprep.subr.bf16.mxu0 %v5649_v0  ;;  %5185 = vmatprep.mubr.msk.bf16.mxu0 %vm5650_vm0, %v5649_v0  ;;  %v140_v2 = vld [vmem:[#allocation2] sm:$0xff]  ;;  %v4461_v4 = vld [vmem:[#allocation4] ss:$0 sm:$0xff]  ;;  %vm203_vm2 = vcmask 261120   ;;  %v251_v32 = vld [vmem:[#allocation9 + $0x90] sm:$0xff]  ;;  %v5651_v37 = vmov 0  }
  0x59   :  { %5184 = vmatpush3.bf16.msra.mxu0 %v5220_v1  ;;  %v141_v3 = vpack.c.bf16 %v140_v2, %v140_v2  ;;  %v249_v16 = vld [vmem:[#allocation9 + $0x80] sm:$0xff]  ;;  %v250_v18 = vld [vmem:[#allocation9 + $0x88] sm:$0xff]  ;;  %v259_v33 = vld [vmem:[#allocation9 + $0xd0] sm:$0xff]  ;;  %544 = vmatprep.mubr.bf16.mxu1 %v5651_v37  ;;  %vm4450_vm3 = vcmask 392192  }
  0x5a   :  { %v257_v17 = vld [vmem:[#allocation9 + $0xc0] sm:$0xff]  ;;  %v258_v20 = vld [vmem:[#allocation9 + $0xc8] sm:$0xff]  ;;  %v252_v34 = vld [vmem:[#allocation9 + $0x98] sm:$0xff]  ;;  %v4487_v35 = vcombine.high %v251_v32, %v259_v33  ;;  %v4486_v38 = vcombine.low %v251_v32, %v259_v33 }
  0x5b   :  { %v4483_v19 = vcombine.high %v249_v16, %v257_v17  ;;  %v4484_v21 = vcombine.low %v250_v18, %v258_v20  ;;  %v4485_v22 = vcombine.high %v250_v18, %v258_v20  ;;  %v4482_v23 = vcombine.low %v249_v16, %v257_v17  ;;  %v233_v24 = vld [vmem:[#allocation9] sm:$0xff]  ;;  %v234_v26 = vld [vmem:[#allocation9 + $0x8] sm:$0xff]  ;;  %v260_v36 = vld [vmem:[#allocation9 + $0xd8] sm:$0xff] }
  0x5c   :  { %5186 = vmatmul.mubr.msk.bf16.vlgmr.msra.gmra.mxu0 %vm157_vm1, %v141_v3  ;;  %v241_v25 = vld [vmem:[#allocation9 + $0x40] sm:$0xff]  ;;  %v242_v28 = vld [vmem:[#allocation9 + $0x48] sm:$0xff]  ;;  %v4488_v39 = vcombine.low %v252_v34, %v260_v36  ;;  %v4489_v40 = vcombine.high %v252_v34, %v260_v36  ;;  %v235_v49 = vld [vmem:[#allocation9 + $0x10] sm:$0xff] }
  0x5d   :  { %524 = vmatprep.subr.bf16.mxu1 %v4483_v19  ;;  %565 = vmatprep.subr.bf16.mxu0 %v4485_v22  ;;  %v4467_v27 = vcombine.high %v233_v24, %v241_v25  ;;  %v4468_v29 = vcombine.low %v234_v26, %v242_v28  ;;  %v4469_v30 = vcombine.high %v234_v26, %v242_v28  ;;  %v4464_v45 = vld [vmem:[%s6036_s5] ss:$0 sm:$0xff]  ;;  %v243_v50 = vld [vmem:[#allocation9 + $0x50] sm:$0xff]  ;;  %v236_v51 = vld [vmem:[#allocation9 + $0x18] sm:$0xff] }
  0x5e   :  { %525 = vmatpush1.bf16.msra.mxu1 %v4482_v23  ;;  %566 = vmatpush1.bf16.msra.mxu0 %v4484_v21  ;;  %v4466_v31 = vcombine.low %v233_v24, %v241_v25  ;;  %v4465_v47 = vld [vmem:[%s6037_s6] ss:$0 sm:$0xff]  ;;  %v244_v52 = vld [vmem:[#allocation9 + $0x58] sm:$0xff]  ;;  %v4471_v55 = vcombine.high %v235_v49, %v243_v50  ;;  %v254_v59 = vld [vmem:[#allocation9 + $0xa8] sm:$0xff]  ;;  %v4470_v61 = vcombine.low %v235_v49, %v243_v50 }
  0x5f   :  { %526 = vmatprep.subr.bf16.mxu1 %v4467_v27  ;;  %567 = vmatprep.subr.bf16.mxu0 %v4469_v30  ;;  %v4473_v56 = vcombine.high %v236_v51, %v244_v52  ;;  %v253_v57 = vld [vmem:[#allocation9 + $0xa0] sm:$0xff]  ;;  %v262_v60 = vld [vmem:[#allocation9 + $0xe8] sm:$0xff]  ;;  %v4472_v62 = vcombine.low %v236_v51, %v244_v52  ;;  %v239_v18 = vld [vmem:[#allocation9 + $0x30] sm:$0xff] }
  0x60   :  { %585 = vmatprep.mubr.bf16.mxu0 %v5651_v37  ;;  %v261_v58 = vld [vmem:[#allocation9 + $0xe0] sm:$0xff]  ;;  %v4493_v1 = vcombine.high %v254_v59, %v262_v60  ;;  %v247_v19 = vld [vmem:[#allocation9 + $0x70] sm:$0xff]  ;;  %v240_v20 = vld [vmem:[#allocation9 + $0x38] sm:$0xff] }
  0x61   :  { %v4491_v63 = vcombine.high %v253_v57, %v261_v58  ;;  %v237_v2 = vld [vmem:[#allocation9 + $0x20] sm:$0xff]  ;;  %v248_v21 = vld [vmem:[#allocation9 + $0x78] sm:$0xff]  ;;  %v4479_v24 = vcombine.high %v239_v18, %v247_v19  ;;  %v4478_v26 = vcombine.low %v239_v18, %v247_v19  ;;  %v5225_v32 = vld [vmem:[#allocation12 + $0x70] sm:$0xff]  }
  0x62   :  { %527 = vmatpush1.bf16.msra.mxu1 %v4466_v31  ;;  %568 = vmatpush1.bf16.msra.mxu0 %v4468_v29  ;;  %v245_v3 = vld [vmem:[#allocation9 + $0x60] sm:$0xff]  ;;  %v4481_v25 = vcombine.high %v240_v20, %v248_v21  ;;  %v4480_v27 = vcombine.low %v240_v20, %v248_v21  ;;  %v5221_v28 = vld [vmem:[#allocation12 + $0x78] sm:$0xff]   ;;  %v5226_v33 = vld [vmem:[#allocation12 + $0xf0] sm:$0xff]  }
  0x63   :  { %606 = vmatprep.subr.bf16.mxu1 %v4487_v35  ;;  %647 = vmatprep.subr.bf16.mxu0 %v4489_v40  ;;  %v5222_v29 = vld [vmem:[#allocation12 + $0xf8] sm:$0xff]   ;;  %v5227_v34 = vld [vmem:[#allocation12 + $0x30] sm:$0xff]   ;;  %v5229_v36 = vld [vmem:[#allocation12 + $0x68] sm:$0xff]  }
  0x64   :  { %v5223_v30 = vld [vmem:[#allocation12 + $0x38] sm:$0xff]   ;;  %v5228_v35 = vld [vmem:[#allocation12 + $0xb0] sm:$0xff]   ;;  %v5232_v40 = vld [vmem:[#allocation12 + $0xa8] sm:$0xff]  }
  0x65   :  { %v5224_v31 = vld [vmem:[#allocation12 + $0xb8] sm:$0xff]   ;;  %v5241_v49 = vld [vmem:[#allocation12 + $0x50] sm:$0xff]  }
  0x66   :  { %v5242_v50 = vld [vmem:[#allocation12 + $0xd0] sm:$0xff]  }
  0x67   :  { %v5243_v51 = vld [vmem:[#allocation12 + $0x10] sm:$0xff]  }
  0x68   :  { %v5244_v52 = vld [vmem:[#allocation12 + $0x90] sm:$0xff]  }
 0x11c   :  { %v195_v5 = vpop.f32.mrf.mxu0 }
 0x11d   :  { %v196_v6 = vadd.f32 %v4461_v4, %v195_v5  ;;  %v238_v4 = vld [vmem:[#allocation9 + $0x28] sm:$0xff] }
 0x11e   :  { %v5187_v7 = vpop.f32.mrf.mxu0  ;;  %v246_v5 = vld [vmem:[#allocation9 + $0x68] sm:$0xff] }
 0x11f   :  { %v204_v8 = vsel %vm203_vm2, %v196_v6, 0.0  ;;  %v4492_v7 = vcombine.low %v254_v59, %v262_v60  ;;  %v5250_v59 = vld [vmem:[#allocation12 + $0xc0] sm:$0xff]  }
 0x120   :  { %205 = vadd.xlane.f32.xlu0 %v204_v8  ;;  %v198_v9 = vpop.f32.mrf.mxu0  ;;  %v4475_v8 = vcombine.high %v237_v2, %v245_v3  ;;  %v5251_v60 = vld [vmem:[#allocation12] sm:$0xff]  }
 0x121   :  { %v4477_v9 = vcombine.high %v238_v4, %v246_v5 }
 0x122   :  { %v5188_v10 = vpop.f32.mrf.mxu0 }
 0x123   :  { %v255_v10 = vld [vmem:[#allocation9 + $0xb0] sm:$0xff] }
 0x1a9   :  { %v206_v11 = vpop.xlane.xlu0 %205 }
 0x1aa   :  { %v208_v12 = vmul.f32 0.03125, %v206_v11  ;;  %v263_v11 = vld [vmem:[#allocation9 + $0xf0] sm:$0xff] }
 0x1ab   :  { %v4495_v16 = vcombine.high %v255_v10, %v263_v11  ;;  %v4494_v22 = vcombine.low %v255_v10, %v263_v11 }
 0x1ac   :  { %v209_v13 = vsub.f32 %v196_v6, %v208_v12  ;;  %v4490_v6 = vcombine.low %v253_v57, %v261_v58  ;;  %v256_v12 = vld [vmem:[#allocation9 + $0xb8] sm:$0xff]  ;;  %v5248_v57 = vld [vmem:[#allocation12 + $0x88] sm:$0xff]   ;;  %v5249_v58 = vld [vmem:[#allocation12 + $0x40] sm:$0xff]  }
 0x1ae   :  { %v210_v14 = vmul.f32 %v209_v13, %v209_v13 }
 0x1b0   :  { %v211_v15 = vsel %vm203_vm2, %v210_v14, 0.0  ;;  %v4474_v14 = vcombine.low %v237_v2, %v245_v3 }
 0x1b1   :  { %212 = vadd.xlane.f32.xlu0 %v211_v15  ;;  %v4476_v15 = vcombine.low %v238_v4, %v246_v5  ;;  %v5807_v5 = vld [vmem:[#allocation10] sm:$0xff] }
 0x23a   :  { %v213_v41 = vpop.xlane.xlu0 %212 }
 0x23b   :  { %v214_v42 = vmul.f32 0.03125, %v213_v41  ;;  %v5233_v41 = vld [vmem:[#allocation12 + $0x60] sm:$0xff]  }
 0x23d   :  { %v215_v43 = vadd.f32 1e-05, %v214_v42  ;;  %v5234_v42 = vld [vmem:[#allocation12 + $0xe0] sm:$0xff]  }
 0x23f   :  { %5481 = vrsqrt.f32 %v215_v43  ;;  %v5235_v43 = vld [vmem:[#allocation12 + $0x20] sm:$0xff]  }
 0x24c   :  { %v5482_v44 = vpop.eup %5481 }
 0x24d   :  { %v217_v46 = vmul.f32 %v5482_v44, %v209_v13  ;;  %v264_v13 = vld [vmem:[#allocation9 + $0xf8] sm:$0xff]  ;;  %v5236_v44 = vld [vmem:[#allocation12 + $0xa0] sm:$0xff]  }
 0x24e   :  { %v4497_v17 = vcombine.high %v256_v12, %v264_v13  ;;  %v4496_v23 = vcombine.low %v256_v12, %v264_v13 }
 0x24f   :  { %v224_v48 = vmul.f32 %v4464_v45, %v217_v46  ;;  %v5237_v45 = vld [vmem:[#allocation12 + $0x58] sm:$0xff]  }
 0x250   :  { %v5238_v46 = vld [vmem:[#allocation12 + $0xd8] sm:$0xff]  }
 0x251   :  { %v5771_v53 = vadd.f32 %v4465_v47, %v224_v48  ;;  %v5239_v47 = vld [vmem:[#allocation12 + $0x18] sm:$0xff]  }
 0x252   :  { %v5240_v48 = vld [vmem:[#allocation12 + $0x98] sm:$0xff]  }
 0x253   :  { %v5775_v54 = vpack.c.bf16 %v5771_v53, %v5771_v53 }
 0x255   :  { %4498 = vmatmul.mubr.msk.bf16.vlgmr.msra.gmra.mxu1 %vm203_vm2, %v5775_v54  ;;  %4499 = vmatmul.mubr.msk.bf16.vlgmr.msra.gmra.mxu0 %vm203_vm2, %v5775_v54 }
 0x256   :  { %607 = vmatpush1.bf16.msra.mxu1 %v4486_v38  ;;  %648 = vmatpush1.bf16.msra.mxu0 %v4488_v39  ;;  %v5230_v38 = vld [vmem:[#allocation12 + $0xe8] sm:$0xff]  }
 0x257   :  { %608 = vmatprep.subr.bf16.mxu1 %v4471_v55  ;;  %649 = vmatprep.subr.bf16.mxu0 %v4473_v56  ;;  %v5231_v39 = vld [vmem:[#allocation12 + $0x28] sm:$0xff]  }
 0x258   :  { %626 = vmatprep.mubr.bf16.mxu1 %v5651_v37  ;;  %667 = vmatprep.mubr.bf16.mxu0 %v5651_v37  ;;  %v5246_v55 = vld [vmem:[#allocation12 + $0xc8] sm:$0xff]  }
 0x259   :  { %v5247_v56 = vld [vmem:[#allocation12 + $0x8] sm:$0xff]  }
 0x25a   :  { %609 = vmatpush1.bf16.msra.mxu1 %v4470_v61  ;;  %650 = vmatpush1.bf16.msra.mxu0 %v4472_v62  ;;  %v5252_v61 = vld [vmem:[#allocation12 + $0x80] sm:$0xff]   ;;  %v5253_v62 = vld [vmem:[#allocation12 + $0x178] sm:$0xff]  }
 0x25b   :  { %688 = vmatprep.subr.bf16.mxu1 %v4491_v63  ;;  %729 = vmatprep.subr.bf16.mxu0 %v4493_v1  ;;  %v5254_v63 = vld [vmem:[#allocation12 + $0x1f8] sm:$0xff]   ;;  %v269_v1 = vlaneseq }
 0x25d   :  { %4500 = vmatmul.mubr.msk.bf16.vlgmr.msra.gmra.mxu1 %vm203_vm2, %v5775_v54  ;;  %4501 = vmatmul.mubr.msk.bf16.vlgmr.msra.gmra.mxu0 %vm203_vm2, %v5775_v54  ;;  %v5799_v2 = vshrl.u32 %v269_v1, 7  ;;  %v5265_v1 = vld [vmem:[#allocation12 + $0x160] sm:$0xff]  }
 0x25e   :  { %689 = vmatpush1.bf16.msra.mxu1 %v4490_v6  ;;  %730 = vmatpush1.bf16.msra.mxu0 %v4492_v7 }
 0x25f   :  { %690 = vmatprep.subr.bf16.mxu1 %v4475_v8  ;;  %731 = vmatprep.subr.bf16.mxu0 %v4477_v9  ;;  %v5802_v3 = vsub.s32 0, %v5799_v2  ;;  %v5805_v4 = vsub.s32 2, %v5799_v2  ;;  %v5810_v6 = vsub.s32 1, %v5799_v2  ;;  %v5813_v7 = vsub.s32 3, %v5799_v2 }
 0x260   :  { %708 = vmatprep.mubr.bf16.mxu1 %v5651_v37  ;;  %749 = vmatprep.mubr.bf16.mxu0 %v5651_v37  ;;  %v5824_v20 = vsub.s32 5, %v5799_v2  ;;  %v5827_v21 = vsub.s32 7, %v5799_v2 }
 0x261   :  { %v272_v8 = vrot.slane %v5807_v5, %v5802_v3  ;;  %v280_v9 = vrot.slane %v5807_v5, %v5805_v4  ;;  %v276_v10 = vrot.slane %v5807_v5, %v5810_v6  ;;  %v284_v11 = vrot.slane %v5807_v5, %v5813_v7 }
 0x262   :  { %691 = vmatpush1.bf16.msra.mxu1 %v4474_v14  ;;  %732 = vmatpush1.bf16.msra.mxu0 %v4476_v15 }
 0x263   :  { %770 = vmatprep.subr.bf16.mxu1 %v4495_v16  ;;  %811 = vmatprep.subr.bf16.mxu0 %v4497_v17 }
 0x265   :  { %4502 = vmatmul.mubr.msk.bf16.vlgmr.msra.gmra.mxu1 %vm203_vm2, %v5775_v54  ;;  %4503 = vmatmul.mubr.msk.bf16.vlgmr.msra.gmra.mxu0 %vm203_vm2, %v5775_v54 }
 0x266   :  { %771 = vmatpush1.bf16.msra.mxu1 %v4494_v22  ;;  %812 = vmatpush1.bf16.msra.mxu0 %v4496_v23 }
 0x267   :  { %772 = vmatprep.subr.bf16.mxu1 %v4479_v24  ;;  %813 = vmatprep.subr.bf16.mxu0 %v4481_v25 }
 0x268   :  { %790 = vmatprep.mubr.bf16.mxu1 %v5651_v37  ;;  %831 = vmatprep.mubr.bf16.mxu0 %v5651_v37 }
 0x26a   :  { %773 = vmatpush1.bf16.msra.mxu1 %v4478_v26  ;;  %814 = vmatpush1.bf16.msra.mxu0 %v4480_v27 }
 0x26b   :  { %4825 = vmatprep.subr.bf16.mxu1 %v5221_v28  ;;  %4847 = vmatprep.subr.bf16.mxu0 %v5222_v29 }
 0x26d   :  { %4504 = vmatmul.mubr.msk.bf16.vlgmr.msra.gmra.mxu1 %vm203_vm2, %v5775_v54  ;;  %4505 = vmatmul.mubr.msk.bf16.vlgmr.msra.gmra.mxu0 %vm203_vm2, %v5775_v54  ;;  %v5245_v54 = vld [vmem:[#allocation12 + $0x48] sm:$0xff]  }
 0x26e   :  { %4826 = vmatpush3.bf16.msra.mxu1 %v5223_v30  ;;  %4848 = vmatpush3.bf16.msra.mxu0 %v5224_v31 }
 0x26f   :  { %4827 = vmatprep.subr.bf16.mxu1 %v5225_v32  ;;  %4849 = vmatprep.subr.bf16.mxu0 %v5226_v33  ;;  %v292_v32 = vrot.slane %v5807_v5, %v5824_v20  ;;  %v300_v33 = vrot.slane %v5807_v5, %v5827_v21 }
 0x272   :  { %4828 = vmatpush3.bf16.msra.mxu1 %v5227_v34  ;;  %4850 = vmatpush3.bf16.msra.mxu0 %v5228_v35  ;;  %v5255_v34 = vld [vmem:[#allocation12 + $0x138] sm:$0xff]  }
 0x273   :  { %4829 = vmatprep.subr.bf16.mxu1 %v5229_v36  ;;  %4851 = vmatprep.subr.bf16.mxu0 %v5230_v38  ;;  %v5256_v35 = vld [vmem:[#allocation12 + $0x1b8] sm:$0xff]  }
 0x276   :  { %4830 = vmatpush3.bf16.msra.mxu1 %v5231_v39  ;;  %4852 = vmatpush3.bf16.msra.mxu0 %v5232_v40 }
 0x277   :  { %4831 = vmatprep.subr.bf16.mxu1 %v5233_v41  ;;  %4853 = vmatprep.subr.bf16.mxu0 %v5234_v42  ;;  %v5257_v41 = vld [vmem:[#allocation12 + $0x170] sm:$0xff]  }
 0x278   :  { %v5258_v42 = vld [vmem:[#allocation12 + $0x1f0] sm:$0xff]  }
 0x27a   :  { %4832 = vmatpush3.bf16.msra.mxu1 %v5235_v43  ;;  %4854 = vmatpush3.bf16.msra.mxu0 %v5236_v44 }
 0x27b   :  { %4833 = vmatprep.subr.bf16.mxu1 %v5237_v45  ;;  %4855 = vmatprep.subr.bf16.mxu0 %v5238_v46 }
 0x27e   :  { %4834 = vmatpush3.bf16.msra.mxu1 %v5239_v47  ;;  %4856 = vmatpush3.bf16.msra.mxu0 %v5240_v48  ;;  %v5259_v47 = vld [vmem:[#allocation12 + $0x130] sm:$0xff]  }
 0x27f   :  { %4835 = vmatprep.subr.bf16.mxu1 %v5241_v49  ;;  %4857 = vmatprep.subr.bf16.mxu0 %v5242_v50  ;;  %v5260_v48 = vld [vmem:[#allocation12 + $0x1b0] sm:$0xff]  }
 0x282   :  { %4836 = vmatpush3.bf16.msra.mxu1 %v5243_v51  ;;  %4858 = vmatpush3.bf16.msra.mxu0 %v5244_v52  ;;  %v5261_v51 = vld [vmem:[#allocation12 + $0x168] sm:$0xff]  }
 0x283   :  { %4837 = vmatprep.subr.bf16.mxu1 %v5245_v54  ;;  %4859 = vmatprep.subr.bf16.mxu0 %v5246_v55  ;;  %v5262_v52 = vld [vmem:[#allocation12 + $0x1e8] sm:$0xff]  }
 0x286   :  { %4838 = vmatpush3.bf16.msra.mxu1 %v5247_v56  ;;  %4860 = vmatpush3.bf16.msra.mxu0 %v5248_v57 }
 0x287   :  { %4839 = vmatprep.subr.bf16.mxu1 %v5249_v58  ;;  %4861 = vmatprep.subr.bf16.mxu0 %v5250_v59 }
 0x28a   :  { %4840 = vmatpush3.bf16.msra.mxu1 %v5251_v60  ;;  %4862 = vmatpush3.bf16.msra.mxu0 %v5252_v61  ;;  %v5263_v60 = vld [vmem:[#allocation12 + $0x128] sm:$0xff]  }
 0x28b   :  { %4869 = vmatprep.subr.bf16.mxu1 %v5253_v62  ;;  %4891 = vmatprep.subr.bf16.mxu0 %v5254_v63  ;;  %v5264_v61 = vld [vmem:[#allocation12 + $0x1a8] sm:$0xff]  }
 0x315   :  { %v546_v12 = vpop.f32.mrf.mxu1  ;;  %v587_v13 = vpop.f32.mrf.mxu0 }
 0x316   :  { %v547_v14 = vadd.f32 %v546_v12, %v272_v8  ;;  %v588_v15 = vadd.f32 %v587_v13, %v280_v9  ;;  %v5266_v8 = vld [vmem:[#allocation12 + $0x1e0] sm:$0xff]  }
 0x317   :  { %v548_v16 = vpop.f32.mrf.mxu1  ;;  %v589_v17 = vpop.f32.mrf.mxu0  ;;  %v5267_v12 = vld [vmem:[#allocation12 + $0x120] sm:$0xff]  }
 0x318   :  { %v549_v18 = vadd.f32 %v548_v16, %v276_v10  ;;  %v590_v19 = vadd.f32 %v589_v17, %v284_v11  ;;  %v840_v22 = vmax.f32 %v547_v14, 0.0  ;;  %v842_v23 = vmax.f32 %v588_v15, 0.0  ;;  %v5268_v13 = vld [vmem:[#allocation12 + $0x1a0] sm:$0xff]   ;;  %v5844_v14 = vld [vmem:[#allocation10 + $0x8] sm:$0xff]  ;;  %v5269_v17 = vld [vmem:[#allocation12 + $0x158] sm:$0xff]  }
 0x319   :  { %v550_v24 = vpop.f32.mrf.mxu1  ;;  %v591_v25 = vpop.f32.mrf.mxu0  ;;  %v5842_v11 = vsub.s32 6, %v5799_v2 }
 0x31a   :  { %v841_v26 = vmax.f32 %v549_v18, 0.0  ;;  %v843_v27 = vmax.f32 %v590_v19, 0.0  ;;  %v856_v36 = vpack.c.bf16 %v840_v22, %v840_v22  ;;  %v858_v38 = vpack.c.bf16 %v842_v23, %v842_v23  ;;  %v5270_v18 = vld [vmem:[#allocation12 + $0x1d8] sm:$0xff]  }
 0x31b   :  { %v551_v28 = vpop.f32.mrf.mxu1  ;;  %v592_v29 = vpop.f32.mrf.mxu0  ;;  %v328_v19 = vrot.slane %v5844_v14, %v5842_v11  ;;  %v5271_v24 = vld [vmem:[#allocation12 + $0x118] sm:$0xff]  }
 0x31c   :  { %v857_v30 = vpack.c.bf16 %v841_v26, %v841_v26  ;;  %v859_v31 = vpack.c.bf16 %v843_v27, %v843_v27  ;;  %v5272_v25 = vld [vmem:[#allocation12 + $0x198] sm:$0xff]   ;;  %v5849_v26 = vsub.s32 4, %v5799_v2  ;;  %v5273_v29 = vld [vmem:[#allocation12 + $0x150] sm:$0xff]  }
 0x31d   :  { %v5833_v39 = vpop.f32.mrf.mxu1  ;;  %v5835_v40 = vpop.f32.mrf.mxu0 }
 0x31e   :  { %1935 = vmatprep.mubr.bf16.mxu1 %v857_v30  ;;  %1975 = vmatprep.mubr.bf16.mxu0 %v859_v31  ;;  %v5274_v30 = vld [vmem:[#allocation12 + $0x1d0] sm:$0xff]   ;;  %v288_v2 = vrot.slane %v5807_v5, %v5849_v26 }
 0x31f   :  { %v630_v43 = vpop.f32.mrf.mxu1  ;;  %v671_v44 = vpop.f32.mrf.mxu0  ;;  %1936 = vmatmul.mubr.bf16.vlgmr.msra.gmra.mxu1 %v856_v36  ;;  %1976 = vmatmul.mubr.bf16.vlgmr.msra.gmra.mxu0 %v858_v38  ;;  %v296_v36 = vrot.slane %v5807_v5, %v5842_v11 }
 0x320   :  { %v631_v45 = vadd.f32 %v630_v43, %v292_v32  ;;  %v672_v46 = vadd.f32 %v671_v44, %v300_v33  ;;  %4870 = vmatpush3.bf16.msra.mxu1 %v5255_v34  ;;  %4892 = vmatpush3.bf16.msra.mxu0 %v5256_v35  ;;  %v5275_v34 = vld [vmem:[#allocation12 + $0x110] sm:$0xff]   ;;  %v5278_v43 = vld [vmem:[#allocation12 + $0x1c8] sm:$0xff]   ;;  %v308_v44 = vrot.slane %v5844_v14, %v5810_v6 }
 0x321   :  { %v632_v49 = vpop.f32.mrf.mxu1  ;;  %v673_v50 = vpop.f32.mrf.mxu0  ;;  %4871 = vmatprep.subr.bf16.mxu1 %v5257_v41  ;;  %4893 = vmatprep.subr.bf16.mxu0 %v5258_v42  ;;  %v5276_v35 = vld [vmem:[#allocation12 + $0x190] sm:$0xff]   ;;  %v5277_v42 = vld [vmem:[#allocation12 + $0x148] sm:$0xff]   ;;  %v629_v5 = vadd.f32 %v5833_v39, %v288_v2  ;;  %v5303_v2 = vld [vmem:[#allocation12 + $0x218] sm:$0xff]  }
 0x322   :  { %v845_v54 = vmax.f32 %v631_v45, 0.0  ;;  %v847_v55 = vmax.f32 %v672_v46, 0.0  ;;  %v316_v45 = vrot.slane %v5844_v14, %v5813_v7  ;;  %v5280_v49 = vld [vmem:[#allocation12 + $0x188] sm:$0xff]   ;;  %v670_v50 = vadd.f32 %v5835_v40, %v296_v36  ;;  %v5287_v40 = vld [vmem:[#allocation12 + $0x238] sm:$0xff]  }
 0x323   :  { %v633_v56 = vpop.f32.mrf.mxu1  ;;  %v674_v57 = vpop.f32.mrf.mxu0  ;;  %v5304_v36 = vld [vmem:[#allocation12 + $0x298] sm:$0xff]  }
 0x324   :  { %v861_v58 = vpack.c.bf16 %v845_v54, %v845_v54  ;;  %v863_v59 = vpack.c.bf16 %v847_v55, %v847_v55  ;;  %4872 = vmatpush3.bf16.msra.mxu1 %v5259_v47  ;;  %4894 = vmatpush3.bf16.msra.mxu0 %v5260_v48  ;;  %v5279_v48 = vld [vmem:[#allocation12 + $0x108] sm:$0xff]   ;;  %v5283_v56 = vld [vmem:[#allocation12 + $0x100] sm:$0xff]  }
 0x325   :  { %v5837_v62 = vpop.f32.mrf.mxu1  ;;  %v5839_v63 = vpop.f32.mrf.mxu0  ;;  %4873 = vmatprep.subr.bf16.mxu1 %v5261_v51  ;;  %4895 = vmatprep.subr.bf16.mxu0 %v5262_v52  ;;  %v5281_v51 = vld [vmem:[#allocation12 + $0x140] sm:$0xff]  }
 0x326   :  { %2015 = vmatprep.mubr.bf16.mxu1 %v861_v58  ;;  %2055 = vmatprep.mubr.bf16.mxu0 %v863_v59  ;;  %v5282_v52 = vld [vmem:[#allocation12 + $0x1c0] sm:$0xff]   ;;  %v844_v58 = vmax.f32 %v629_v5, 0.0  ;;  %v846_v59 = vmax.f32 %v670_v50, 0.0  ;;  %v5311_v5 = vld [vmem:[#allocation12 + $0x208] sm:$0xff]  }
 0x327   :  { %v712_v9 = vpop.f32.mrf.mxu1  ;;  %v753_v10 = vpop.f32.mrf.mxu0  ;;  %v5284_v57 = vld [vmem:[#allocation12 + $0x180] sm:$0xff]  }
 0x328   :  { %4874 = vmatpush3.bf16.msra.mxu1 %v5263_v60  ;;  %4896 = vmatpush3.bf16.msra.mxu0 %v5264_v61  ;;  %v713_v54 = vadd.f32 %v712_v9, %v308_v44  ;;  %v754_v55 = vadd.f32 %v753_v10, %v316_v45  ;;  %v5285_v60 = vld [vmem:[#allocation12 + $0x278] sm:$0xff]   ;;  %v5308_v44 = vld [vmem:[#allocation12 + $0x290] sm:$0xff]   ;;  %v5309_v45 = vld [vmem:[#allocation12 + $0x248] sm:$0xff]  }
 0x329   :  { %v714_v15 = vpop.f32.mrf.mxu1  ;;  %v755_v16 = vpop.f32.mrf.mxu0  ;;  %4875 = vmatprep.subr.bf16.mxu1 %v5265_v1  ;;  %4897 = vmatprep.subr.bf16.mxu0 %v5266_v8  ;;  %v5286_v61 = vld [vmem:[#allocation12 + $0x2f8] sm:$0xff]   ;;  %v860_v8 = vpack.c.bf16 %v844_v58, %v844_v58  ;;  %v5315_v58 = vld [vmem:[#allocation12 + $0x200] sm:$0xff]  }
 0x32a   :  { %v849_v1 = vmax.f32 %v713_v54, 0.0  ;;  %v851_v39 = vmax.f32 %v754_v55, 0.0  ;;  %v5288_v9 = vld [vmem:[#allocation12 + $0x2b8] sm:$0xff]   ;;  %v5290_v15 = vld [vmem:[#allocation12 + $0x2f0] sm:$0xff]   ;;  %v5314_v55 = vld [vmem:[#allocation12 + $0x2c0] sm:$0xff]  }
 0x32b   :  { %v715_v22 = vpop.f32.mrf.mxu1  ;;  %v756_v23 = vpop.f32.mrf.mxu0 }
 0x32c   :  { %4876 = vmatpush3.bf16.msra.mxu1 %v5267_v12  ;;  %4898 = vmatpush3.bf16.msra.mxu0 %v5268_v13  ;;  %v862_v12 = vpack.c.bf16 %v846_v59, %v846_v59  ;;  %v865_v10 = vpack.c.bf16 %v849_v1, %v849_v1  ;;  %v5289_v13 = vld [vmem:[#allocation12 + $0x270] sm:$0xff]   ;;  %v867_v16 = vpack.c.bf16 %v851_v39, %v851_v39  ;;  %v5294_v22 = vld [vmem:[#allocation12 + $0x2e8] sm:$0xff]   ;;  %v5318_v1 = vld [vmem:[#allocation12 + $0x3f8] sm:$0xff]  }
 0x32d   :  { %v5851_v27 = vpop.f32.mrf.mxu1  ;;  %v833_v28 = vpop.f32.mrf.mxu0  ;;  %4877 = vmatprep.subr.bf16.mxu1 %v5269_v17  ;;  %4899 = vmatprep.subr.bf16.mxu0 %v5270_v18  ;;  %v5291_v17 = vld [vmem:[#allocation12 + $0x230] sm:$0xff]   ;;  %v5295_v23 = vld [vmem:[#allocation12 + $0x228] sm:$0xff]  }
 0x32e   :  { %v5853_v31 = vadd.f32 %v833_v28, %v328_v19  ;;  %v5292_v18 = vld [vmem:[#allocation12 + $0x2b0] sm:$0xff]   ;;  %v5293_v19 = vld [vmem:[#allocation12 + $0x268] sm:$0xff]   ;;  %v5298_v28 = vld [vmem:[#allocation12 + $0x2e0] sm:$0xff]  }
 0x32f   :  { %v5855_v32 = vpop.f32.mrf.mxu1  ;;  %v5857_v33 = vpop.f32.mrf.mxu0 }
 0x330   :  { %4878 = vmatpush3.bf16.msra.mxu1 %v5271_v24  ;;  %4900 = vmatpush3.bf16.msra.mxu0 %v5272_v25  ;;  %v5296_v24 = vld [vmem:[#allocation12 + $0x2a8] sm:$0xff]   ;;  %v5297_v25 = vld [vmem:[#allocation12 + $0x260] sm:$0xff]  }
 0x331   :  { %v796_v38 = vpop.f32.mrf.mxu1  ;;  %v837_v41 = vpop.f32.mrf.mxu0  ;;  %4879 = vmatprep.subr.bf16.mxu1 %v5273_v29  ;;  %4901 = vmatprep.subr.bf16.mxu0 %v5274_v30  ;;  %v5299_v29 = vld [vmem:[#allocation12 + $0x220] sm:$0xff]  }
 0x332   :  { %v5300_v30 = vld [vmem:[#allocation12 + $0x2a0] sm:$0xff]   ;;  %v5305_v38 = vld [vmem:[#allocation12 + $0x250] sm:$0xff]  }
 0x333   :  { %v797_v46 = vpop.f32.mrf.mxu1  ;;  %v838_v47 = vpop.f32.mrf.mxu0  ;;  %v5306_v41 = vld [vmem:[#allocation12 + $0x2d0] sm:$0xff]  }
 0x334   :  { %4880 = vmatpush3.bf16.msra.mxu1 %v5275_v34  ;;  %4902 = vmatpush3.bf16.msra.mxu0 %v5276_v35  ;;  %v5301_v34 = vld [vmem:[#allocation12 + $0x258] sm:$0xff]   ;;  %v312_v46 = vrot.slane %v5844_v14, %v5805_v4  ;;  %v5310_v47 = vld [vmem:[#allocation12 + $0x2c8] sm:$0xff]  }
 0x335   :  { %4881 = vmatprep.subr.bf16.mxu1 %v5277_v42  ;;  %4903 = vmatprep.subr.bf16.mxu0 %v5278_v43  ;;  %v5302_v35 = vld [vmem:[#allocation12 + $0x2d8] sm:$0xff]   ;;  %v5307_v42 = vld [vmem:[#allocation12 + $0x210] sm:$0xff]   ;;  %v304_v43 = vrot.slane %v5844_v14, %v5802_v3 }
 0x336   :  { %v752_v54 = vadd.f32 %v5839_v63, %v312_v46  ;;  %v5319_v63 = vld [vmem:[#allocation12 + $0x338] sm:$0xff]  }
 0x337   :  { %v711_v50 = vadd.f32 %v5837_v62, %v304_v43  ;;  %v5341_v43 = vld [vmem:[#allocation12 + $0x348] sm:$0xff]  }
 0x338   :  { %4882 = vmatpush3.bf16.msra.mxu1 %v5279_v48  ;;  %4904 = vmatpush3.bf16.msra.mxu0 %v5280_v49  ;;  %v324_v48 = vrot.slane %v5844_v14, %v5824_v20  ;;  %v332_v49 = vrot.slane %v5844_v14, %v5827_v21  ;;  %v850_v62 = vmax.f32 %v752_v54, 0.0 }
 0x339   :  { %4883 = vmatprep.subr.bf16.mxu1 %v5281_v51  ;;  %4905 = vmatprep.subr.bf16.mxu0 %v5282_v52  ;;  %v5312_v51 = vld [vmem:[#allocation12 + $0x288] sm:$0xff]   ;;  %v5313_v52 = vld [vmem:[#allocation12 + $0x240] sm:$0xff]   ;;  %v848_v59 = vmax.f32 %v711_v50, 0.0 }
 0x33c   :  { %4884 = vmatpush3.bf16.msra.mxu1 %v5283_v56  ;;  %4906 = vmatpush3.bf16.msra.mxu0 %v5284_v57  ;;  %v795_v56 = vadd.f32 %v5855_v32, %v324_v48  ;;  %v836_v57 = vadd.f32 %v5857_v33, %v332_v49  ;;  %v5320_v32 = vld [vmem:[#allocation12 + $0x3b8] sm:$0xff]   ;;  %v5321_v33 = vld [vmem:[#allocation12 + $0x370] sm:$0xff]   ;;  %v5345_v48 = vld [vmem:[#allocation12 + $0x340] sm:$0xff]  }
 0x33d   :  { %4913 = vmatprep.subr.bf16.mxu1 %v5285_v60  ;;  %4935 = vmatprep.subr.bf16.mxu0 %v5286_v61  ;;  %v5316_v60 = vld [vmem:[#allocation12 + $0x280] sm:$0xff]   ;;  %v5317_v61 = vld [vmem:[#allocation12 + $0x378] sm:$0xff]  }
 0x33e   :  { %v853_v39 = vmax.f32 %v795_v56, 0.0  ;;  %v5346_v49 = vld [vmem:[#allocation12 + $0x3c0] sm:$0xff]  }
 0x33f   :  { %2016 = vmatmul.mubr.bf16.vlgmr.msra.gmra.mxu1 %v860_v8  ;;  %2056 = vmatmul.mubr.bf16.vlgmr.msra.gmra.mxu0 %v862_v12  ;;  %v864_v8 = vpack.c.bf16 %v848_v59, %v848_v59  ;;  %v866_v12 = vpack.c.bf16 %v850_v62, %v850_v62 }
 0x340   :  { %4914 = vmatpush3.bf16.msra.mxu1 %v5287_v40  ;;  %2095 = vmatprep.mubr.bf16.mxu1 %v865_v10  ;;  %v855_v40 = vmax.f32 %v836_v57, 0.0  ;;  %v5322_v10 = vld [vmem:[#allocation12 + $0x3f0] sm:$0xff]  }
 0x341   :  { %4936 = vmatpush3.bf16.msra.mxu0 %v5288_v9  ;;  %2135 = vmatprep.mubr.bf16.mxu0 %v867_v16  ;;  %v869_v9 = vpack.c.bf16 %v853_v39, %v853_v39  ;;  %v5324_v16 = vld [vmem:[#allocation12 + $0x3b0] sm:$0xff]  }
 0x342   :  { %4915 = vmatprep.subr.bf16.mxu1 %v5289_v13  ;;  %4937 = vmatprep.subr.bf16.mxu0 %v5290_v15  ;;  %v871_v13 = vpack.c.bf16 %v855_v40, %v855_v40  ;;  %v5323_v15 = vld [vmem:[#allocation12 + $0x330] sm:$0xff]  }
 0x344   :  { %4916 = vmatpush3.bf16.msra.mxu1 %v5291_v17  ;;  %v5325_v17 = vld [vmem:[#allocation12 + $0x368] sm:$0xff]  }
 0x345   :  { %4938 = vmatpush3.bf16.msra.mxu0 %v5292_v18  ;;  %4917 = vmatprep.subr.bf16.mxu1 %v5293_v19  ;;  %v5326_v18 = vld [vmem:[#allocation12 + $0x3e8] sm:$0xff]  }
 0x346   :  { %4939 = vmatprep.subr.bf16.mxu0 %v5294_v22  ;;  %v5327_v19 = vld [vmem:[#allocation12 + $0x328] sm:$0xff]  }
 0x347   :  { %v5328_v22 = vld [vmem:[#allocation12 + $0x3a8] sm:$0xff]  }
 0x348   :  { %4918 = vmatpush3.bf16.msra.mxu1 %v5295_v23  ;;  %v5329_v23 = vld [vmem:[#allocation12 + $0x360] sm:$0xff]  }
 0x349   :  { %4940 = vmatpush3.bf16.msra.mxu0 %v5296_v24  ;;  %4919 = vmatprep.subr.bf16.mxu1 %v5297_v25  ;;  %v5330_v24 = vld [vmem:[#allocation12 + $0x3e0] sm:$0xff]  }
 0x34a   :  { %4941 = vmatprep.subr.bf16.mxu0 %v5298_v28  ;;  %v5331_v25 = vld [vmem:[#allocation12 + $0x320] sm:$0xff]  }
 0x34b   :  { %v5332_v28 = vld [vmem:[#allocation12 + $0x3a0] sm:$0xff]  }
 0x34c   :  { %4920 = vmatpush3.bf16.msra.mxu1 %v5299_v29  ;;  %v5333_v29 = vld [vmem:[#allocation12 + $0x358] sm:$0xff]  }
 0x34d   :  { %4942 = vmatpush3.bf16.msra.mxu0 %v5300_v30  ;;  %4921 = vmatprep.subr.bf16.mxu1 %v5301_v34  ;;  %v5334_v30 = vld [vmem:[#allocation12 + $0x3d8] sm:$0xff]  }
 0x34e   :  { %4943 = vmatprep.subr.bf16.mxu0 %v5302_v35  ;;  %v5335_v34 = vld [vmem:[#allocation12 + $0x318] sm:$0xff]  }
 0x34f   :  { %v5336_v35 = vld [vmem:[#allocation12 + $0x398] sm:$0xff]  }
 0x350   :  { %4922 = vmatpush3.bf16.msra.mxu1 %v5303_v2  ;;  %v5337_v2 = vld [vmem:[#allocation12 + $0x350] sm:$0xff]  }
 0x351   :  { %4944 = vmatpush3.bf16.msra.mxu0 %v5304_v36  ;;  %4923 = vmatprep.subr.bf16.mxu1 %v5305_v38  ;;  %v5338_v36 = vld [vmem:[#allocation12 + $0x3d0] sm:$0xff]  }
 0x352   :  { %4945 = vmatprep.subr.bf16.mxu0 %v5306_v41  ;;  %v5339_v38 = vld [vmem:[#allocation12 + $0x310] sm:$0xff]   ;;  %v320_v41 = vrot.slane %v5844_v14, %v5849_v26  ;;  %v5348_v14 = vld [vmem:[#allocation12 + $0x380] sm:$0xff]  }
 0x354   :  { %4924 = vmatpush3.bf16.msra.mxu1 %v5307_v42  ;;  %v5340_v42 = vld [vmem:[#allocation12 + $0x390] sm:$0xff]   ;;  %v793_v46 = vadd.f32 %v5851_v27, %v320_v41 }
 0x355   :  { %4946 = vmatpush3.bf16.msra.mxu0 %v5308_v44  ;;  %4925 = vmatprep.subr.bf16.mxu1 %v5309_v45  ;;  %v5342_v44 = vld [vmem:[#allocation12 + $0x3c8] sm:$0xff]  }
 0x356   :  { %4947 = vmatprep.subr.bf16.mxu0 %v5310_v47  ;;  %v5343_v45 = vld [vmem:[#allocation12 + $0x308] sm:$0xff]   ;;  %v852_v50 = vmax.f32 %v793_v46, 0.0 }
 0x357   :  { %v5344_v47 = vld [vmem:[#allocation12 + $0x388] sm:$0xff]  }
 0x358   :  { %4926 = vmatpush3.bf16.msra.mxu1 %v5311_v5  ;;  %v5347_v5 = vld [vmem:[#allocation12 + $0x300] sm:$0xff]  }
 0x359   :  { %4948 = vmatpush3.bf16.msra.mxu0 %v5312_v51  ;;  %4927 = vmatprep.subr.bf16.mxu1 %v5313_v52  ;;  %v854_v51 = vmax.f32 %v5853_v31, 0.0  ;;  %v868_v52 = vpack.c.bf16 %v852_v50, %v852_v50  ;;  %v4506_v31 = vld [vmem:[%s6043_s12] ss:$0 sm:$0xff] }
 0x35a   :  { %4949 = vmatprep.subr.bf16.mxu0 %v5314_v55 }
 0x35b   :  { %v870_v27 = vpack.c.bf16 %v854_v51, %v854_v51 }
 0x35c   :  { %4928 = vmatpush3.bf16.msra.mxu1 %v5315_v58 }
 0x35d   :  { %4950 = vmatpush3.bf16.msra.mxu0 %v5316_v60  ;;  %4957 = vmatprep.subr.bf16.mxu1 %v5317_v61 }
 0x35e   :  { %4979 = vmatprep.subr.bf16.mxu0 %v5318_v1 }
 0x35f   :  { %2096 = vmatmul.mubr.bf16.vlgmr.msra.gmra.mxu1 %v864_v8 }
 0x360   :  { %2136 = vmatmul.mubr.bf16.vlgmr.msra.gmra.mxu0 %v866_v12  ;;  %4958 = vmatpush3.bf16.msra.mxu1 %v5319_v63 }
 0x361   :  { %2175 = vmatprep.mubr.bf16.mxu1 %v869_v9  ;;  %4980 = vmatpush3.bf16.msra.mxu0 %v5320_v32 }
 0x362   :  { %2215 = vmatprep.mubr.bf16.mxu0 %v871_v13  ;;  %4959 = vmatprep.subr.bf16.mxu1 %v5321_v33 }
 0x363   :  { %4981 = vmatprep.subr.bf16.mxu0 %v5322_v10 }
 0x364   :  { %4960 = vmatpush3.bf16.msra.mxu1 %v5323_v15 }
 0x365   :  { %4982 = vmatpush3.bf16.msra.mxu0 %v5324_v16  ;;  %4961 = vmatprep.subr.bf16.mxu1 %v5325_v17 }
 0x366   :  { %4983 = vmatprep.subr.bf16.mxu0 %v5326_v18 }
 0x368   :  { %4962 = vmatpush3.bf16.msra.mxu1 %v5327_v19 }
 0x369   :  { %4984 = vmatpush3.bf16.msra.mxu0 %v5328_v22  ;;  %4963 = vmatprep.subr.bf16.mxu1 %v5329_v23 }
 0x36a   :  { %4985 = vmatprep.subr.bf16.mxu0 %v5330_v24 }
 0x36c   :  { %4964 = vmatpush3.bf16.msra.mxu1 %v5331_v25 }
 0x36d   :  { %4986 = vmatpush3.bf16.msra.mxu0 %v5332_v28  ;;  %4965 = vmatprep.subr.bf16.mxu1 %v5333_v29 }
 0x36e   :  { %4987 = vmatprep.subr.bf16.mxu0 %v5334_v30 }
 0x370   :  { %4966 = vmatpush3.bf16.msra.mxu1 %v5335_v34 }
 0x371   :  { %4988 = vmatpush3.bf16.msra.mxu0 %v5336_v35  ;;  %4967 = vmatprep.subr.bf16.mxu1 %v5337_v2 }
 0x372   :  { %4989 = vmatprep.subr.bf16.mxu0 %v5338_v36 }
 0x374   :  { %4968 = vmatpush3.bf16.msra.mxu1 %v5339_v38 }
 0x375   :  { %4990 = vmatpush3.bf16.msra.mxu0 %v5340_v42  ;;  %4969 = vmatprep.subr.bf16.mxu1 %v5341_v43 }
 0x376   :  { %4991 = vmatprep.subr.bf16.mxu0 %v5342_v44 }
 0x378   :  { %4970 = vmatpush3.bf16.msra.mxu1 %v5343_v45 }
 0x379   :  { %4992 = vmatpush3.bf16.msra.mxu0 %v5344_v47  ;;  %4971 = vmatprep.subr.bf16.mxu1 %v5345_v48 }
 0x37a   :  { %4993 = vmatprep.subr.bf16.mxu0 %v5346_v49 }
 0x37c   :  { %4972 = vmatpush3.bf16.msra.mxu1 %v5347_v5 }
 0x37d   :  { %4994 = vmatpush3.bf16.msra.mxu0 %v5348_v14  ;;  %5189 = vmatprep.subr.bf16.mxu1 %v5649_v0 }
 0x37f   :  { %2176 = vmatmul.mubr.bf16.vlgmr.msra.gmra.mxu1 %v868_v52 }
 0x380   :  { %2216 = vmatmul.mubr.bf16.vlgmr.msra.gmra.mxu0 %v870_v27  ;;  %5193 = vmatprep.mubr.msk.bf16.mxu1 %vm5650_vm0, %v5649_v0 }
 0x381   :  { %2665 = vmatprep.mubr.bf16.mxu0 %v5651_v37 }
 0x3df   :  { %v4841_v54 = vpop.f32.mrf.mxu1  ;;  %v4863_v55 = vpop.f32.mrf.mxu0 }
 0x3e1   :  { %v4842_v56 = vpop.f32.mrf.mxu1  ;;  %v4864_v57 = vpop.f32.mrf.mxu0 }
 0x3e2   :  { %v4843_v58 = vadd.f32 %v4842_v56, %v4841_v54  ;;  %v4865_v59 = vadd.f32 %v4864_v57, %v4863_v55  ;;  %v5349_v56 = vld [vmem:[#allocation6 + $0x8] sm:$0xff]   ;;  %v5350_v57 = vld [vmem:[#allocation6] sm:$0xff]  }
 0x3e3   :  { %v4844_v60 = vpop.f32.mrf.mxu1  ;;  %v4866_v61 = vpop.f32.mrf.mxu0  ;;  %5190 = vmatpush3.bf16.msra.mxu1 %v5349_v56  ;;  %v4644_v56 = vld [vmem:[%s6037_s6 + $0x1] ss:$0 sm:$0xff] }
 0x3e4   :  { %v1938_v62 = vadd.f32 %v4843_v58, %v4506_v31  ;;  %5191 = vmatprep.subr.bf16.mxu1 %v5649_v0  ;;  %v4635_v61 = vld [vmem:[%s6038_s7] ss:$0 sm:$0xff] }
 0x3e5   :  { %v4845_v1 = vpop.f32.mrf.mxu1  ;;  %v4867_v39 = vpop.f32.mrf.mxu0 }
 0x3e6   :  { %v1978_v40 = vadd.f32 %v4865_v59, %v1938_v62  ;;  %v4636_v1 = vld [vmem:[%s6039_s8] ss:$0 sm:$0xff] }
 0x3e7   :  { %5192 = vmatpush3.bf16.msra.mxu1 %v5350_v57 }
 0x3ff   :  { %v4885_v63 = vpop.f32.mrf.mxu1  ;;  %v4907_v8 = vpop.f32.mrf.mxu0 }
 0x401   :  { %v4886_v32 = vpop.f32.mrf.mxu1  ;;  %v4908_v12 = vpop.f32.mrf.mxu0 }
 0x402   :  { %v4887_v25 = vadd.f32 %v4886_v32, %v4885_v63  ;;  %v4909_v29 = vadd.f32 %v4908_v12, %v4907_v8  ;;  %v4637_v8 = vld [vmem:[#allocation7] ss:$0 sm:$0xff] }
 0x403   :  { %v4888_v33 = vpop.f32.mrf.mxu1  ;;  %v4910_v9 = vpop.f32.mrf.mxu0 }
 0x404   :  { %v2018_v28 = vadd.f32 %v4887_v25, %v1978_v40 }
 0x405   :  { %v4889_v10 = vpop.f32.mrf.mxu1  ;;  %v4911_v13 = vpop.f32.mrf.mxu0 }
 0x406   :  { %v2058_v34 = vadd.f32 %v4909_v29, %v2018_v28  ;;  %v2378_v28 = vld [vmem:[#allocation9 + $0x1c8] sm:$0xff] }
 0x41f   :  { %v4929_v15 = vpop.f32.mrf.mxu1 }
 0x420   :  { %v4951_v16 = vpop.f32.mrf.mxu0 }
 0x421   :  { %v4930_v17 = vpop.f32.mrf.mxu1 }
 0x422   :  { %v4952_v18 = vpop.f32.mrf.mxu0  ;;  %v4931_v30 = vadd.f32 %v4930_v17, %v4929_v15 }
 0x423   :  { %v4932_v19 = vpop.f32.mrf.mxu1  ;;  %v4953_v36 = vadd.f32 %v4952_v18, %v4951_v16 }
 0x424   :  { %v4954_v22 = vpop.f32.mrf.mxu0  ;;  %v2098_v35 = vadd.f32 %v4931_v30, %v2058_v34 }
 0x425   :  { %v4933_v23 = vpop.f32.mrf.mxu1  ;;  %v2369_v22 = vld [vmem:[#allocation9 + $0x180] sm:$0xff] }
 0x426   :  { %v4955_v24 = vpop.f32.mrf.mxu0  ;;  %v2138_v42 = vadd.f32 %v4953_v36, %v2098_v35  ;;  %v2377_v23 = vld [vmem:[#allocation9 + $0x1c0] sm:$0xff]  ;;  %v2354_v36 = vld [vmem:[#allocation9 + $0x108] sm:$0xff] }
 0x427   :  { %v2370_v24 = vld [vmem:[#allocation9 + $0x188] sm:$0xff]  ;;  %v4662_v25 = vcombine.high %v2369_v22, %v2377_v23  ;;  %v4661_v29 = vcombine.low %v2369_v22, %v2377_v23  ;;  %v2353_v35 = vld [vmem:[#allocation9 + $0x100] sm:$0xff] }
 0x428   :  { %v4663_v30 = vcombine.low %v2370_v24, %v2378_v28  ;;  %v4664_v34 = vcombine.high %v2370_v24, %v2378_v28  ;;  %v2375_v24 = vld [vmem:[#allocation9 + $0x1b0] sm:$0xff]  ;;  %v2376_v28 = vld [vmem:[#allocation9 + $0x1b8] sm:$0xff] }
 0x429   :  { %2645 = vmatprep.subr.bf16.mxu0 %v4662_v25  ;;  %v2383_v25 = vld [vmem:[#allocation9 + $0x1f0] sm:$0xff] }
 0x42a   :  { %2646 = vmatpush1.bf16.msra.mxu0 %v4661_v29  ;;  %2686 = vmatprep.subr.bf16.mxu1 %v4664_v34  ;;  %v2384_v29 = vld [vmem:[#allocation9 + $0x1f8] sm:$0xff] }
 0x43f   :  { %v4973_v2 = vpop.f32.mrf.mxu1 }
 0x440   :  { %v4995_v38 = vpop.f32.mrf.mxu0 }
 0x441   :  { %v4974_v41 = vpop.f32.mrf.mxu1 }
 0x442   :  { %v4975_v43 = vadd.f32 %v4974_v41, %v4973_v2  ;;  %v4996_v44 = vpop.f32.mrf.mxu0  ;;  %v2361_v2 = vld [vmem:[#allocation9 + $0x140] sm:$0xff]  ;;  %v2362_v41 = vld [vmem:[#allocation9 + $0x148] sm:$0xff] }
 0x443   :  { %v4976_v45 = vpop.f32.mrf.mxu1  ;;  %v4997_v47 = vadd.f32 %v4996_v44, %v4995_v38  ;;  %v4646_v38 = vcombine.high %v2353_v35, %v2361_v2  ;;  %v4648_v44 = vcombine.high %v2354_v36, %v2362_v41 }
 0x444   :  { %v2178_v46 = vadd.f32 %v4975_v43, %v2138_v42  ;;  %v4998_v48 = vpop.f32.mrf.mxu0  ;;  %v4645_v42 = vcombine.low %v2353_v35, %v2361_v2  ;;  %v4647_v43 = vcombine.low %v2354_v36, %v2362_v41  ;;  %v2371_v45 = vld [vmem:[#allocation9 + $0x190] sm:$0xff]  ;;  %v4674_v35 = vcombine.high %v2375_v24, %v2383_v25  ;;  %v2360_v41 = vld [vmem:[#allocation9 + $0x138] sm:$0xff] }
 0x445   :  { %v4977_v49 = vpop.f32.mrf.mxu1  ;;  %2647 = vmatprep.subr.bf16.mxu0 %v4646_v38  ;;  %v4676_v2 = vcombine.high %v2376_v28, %v2384_v29  ;;  %v2359_v36 = vld [vmem:[#allocation9 + $0x130] sm:$0xff] }
 0x446   :  { %v2218_v5 = vadd.f32 %v4997_v47, %v2178_v46  ;;  %v4999_v50 = vpop.f32.mrf.mxu0  ;;  %2648 = vmatpush1.bf16.msra.mxu0 %v4645_v42  ;;  %v2379_v46 = vld [vmem:[#allocation9 + $0x1d0] sm:$0xff]  ;;  %v2372_v47 = vld [vmem:[#allocation9 + $0x198] sm:$0xff] }
 0x447   :  { %v4665_v48 = vcombine.low %v2371_v45, %v2379_v46  ;;  %v4666_v49 = vcombine.high %v2371_v45, %v2379_v46  ;;  %v2367_v38 = vld [vmem:[#allocation9 + $0x170] sm:$0xff]  ;;  %v2368_v42 = vld [vmem:[#allocation9 + $0x178] sm:$0xff] }
 0x448   :  { %v2223_v14 = vadd.f32 %v2218_v5, %v5771_v53  ;;  %v2380_v5 = vld [vmem:[#allocation9 + $0x1d8] sm:$0xff]  ;;  %v4658_v45 = vcombine.high %v2359_v36, %v2367_v38  ;;  %v4660_v46 = vcombine.high %v2360_v41, %v2368_v42 }
 0x449   :  { %v4667_v50 = vcombine.low %v2372_v47, %v2380_v5  ;;  %2727 = vmatprep.subr.bf16.mxu0 %v4666_v49  ;;  %v5351_v49 = vld [vmem:[#allocation12 + $0x478] sm:$0xff]  }
 0x44a   :  { %v2226_v51 = vsel %vm203_vm2, %v2223_v14, 0.0 }
 0x44b   :  { %2227 = vadd.xlane.f32.xlu1 %v2226_v51 }
 0x4d4   :  { %v2228_v52 = vpop.xlane.xlu1 %2227 }
 0x4d5   :  { %v2229_v27 = vmul.f32 0.03125, %v2228_v52 }
 0x4d7   :  { %v2230_v54 = vsub.f32 %v2223_v14, %v2229_v27  ;;  %v4668_v14 = vcombine.high %v2372_v47, %v2380_v5  ;;  %v4657_v47 = vcombine.low %v2359_v36, %v2367_v38  ;;  %v5352_v5 = vld [vmem:[#allocation12 + $0x4f8] sm:$0xff]  }
 0x4d9   :  { %v2231_v55 = vmul.f32 %v2230_v54, %v2230_v54 }
 0x4db   :  { %v2232_v31 = vsel %vm203_vm2, %v2231_v55, 0.0  ;;  %v4643_v55 = vld [vmem:[%s6036_s5 + $0x1] ss:$0 sm:$0xff] }
 0x4dc   :  { %2233 = vadd.xlane.f32.xlu1 %v2232_v31 }
 0x565   :  { %v2234_v58 = vpop.xlane.xlu1 %2233 }
 0x566   :  { %v2235_v59 = vmul.f32 0.03125, %v2234_v58  ;;  %v2355_v58 = vld [vmem:[#allocation9 + $0x110] sm:$0xff] }
 0x568   :  { %v2236_v60 = vadd.f32 1e-05, %v2235_v59  ;;  %v2363_v59 = vld [vmem:[#allocation9 + $0x150] sm:$0xff] }
 0x56a   :  { %5483 = vrsqrt.f32 %v2236_v60  ;;  %v2356_v60 = vld [vmem:[#allocation9 + $0x118] sm:$0xff] }
 0x577   :  { %v5484_v53 = vpop.eup %5483 }
 0x578   :  { %v2238_v62 = vmul.f32 %v5484_v53, %v2230_v54  ;;  %v2364_v53 = vld [vmem:[#allocation9 + $0x158] sm:$0xff] }
 0x57a   :  { %v2245_v39 = vmul.f32 %v4635_v61, %v2238_v62 }
 0x57c   :  { %v2252_v40 = vadd.f32 %v4636_v1, %v2245_v39  ;;  %v4650_v1 = vcombine.high %v2355_v58, %v2363_v59  ;;  %v4652_v39 = vcombine.high %v2356_v60, %v2364_v53 }
 0x57e   :  { %v2253_v63 = vpack.c.bf16 %v2252_v40, %v2252_v40  ;;  %v2373_v40 = vld [vmem:[#allocation9 + $0x1a0] sm:$0xff] }
 0x580   :  { %5194 = vmatmul.mubr.msk.bf16.vlgmr.msra.gmra.mxu1 %vm203_vm2, %v2253_v63  ;;  %v2381_v63 = vld [vmem:[#allocation9 + $0x1e0] sm:$0xff] }
 0x581   :  { %2706 = vmatprep.mubr.bf16.mxu1 %v5651_v37  ;;  %2687 = vmatpush1.bf16.msra.mxu1 %v4663_v30 }
 0x582   :  { %2688 = vmatprep.subr.bf16.mxu1 %v4648_v44  ;;  %v4675_v44 = vcombine.low %v2376_v28, %v2384_v29 }
 0x585   :  { %2689 = vmatpush1.bf16.msra.mxu1 %v4647_v43  ;;  %v4673_v43 = vcombine.low %v2375_v24, %v2383_v25 }
 0x586   :  { %2768 = vmatprep.subr.bf16.mxu1 %v4668_v14  ;;  %v5354_v14 = vld [vmem:[#allocation12 + $0x4b8] sm:$0xff]  }
 0x640   :  { %v2314_v32 = vpop.f32.mrf.mxu1 }
 0x641   :  { %v2315_v12 = vadd.f32 %v4637_v8, %v2314_v32  ;;  %v2374_v8 = vld [vmem:[#allocation9 + $0x1a8] sm:$0xff] }
 0x642   :  { %v5195_v33 = vpop.f32.mrf.mxu1  ;;  %v2382_v32 = vld [vmem:[#allocation9 + $0x1e8] sm:$0xff] }
 0x643   :  { %v2324_v9 = vsel %vm203_vm2, %v2315_v12, 0.0  ;;  %v4651_v33 = vcombine.low %v2356_v60, %v2364_v53  ;;  %v5366_v60 = vld [vmem:[#allocation12 + $0x4a0] sm:$0xff]   ;;  %v5367_v53 = vld [vmem:[#allocation12 + $0x458] sm:$0xff]  }
 0x644   :  { %2325 = vadd.xlane.f32.xlu0 %v2324_v9  ;;  %v2317_v10 = vpop.f32.mrf.mxu1  ;;  %v4670_v9 = vcombine.high %v2373_v40, %v2381_v63 }
 0x645   :  { %v4672_v10 = vcombine.high %v2374_v8, %v2382_v32 }
 0x646   :  { %v5196_v13 = vpop.f32.mrf.mxu1 }
 0x647   :  { %v2357_v13 = vld [vmem:[#allocation9 + $0x120] sm:$0xff] }
 0x6cd   :  { %v2326_v15 = vpop.xlane.xlu0 %2325 }
 0x6ce   :  { %v2327_v16 = vmul.f32 0.03125, %v2326_v15  ;;  %v2365_v15 = vld [vmem:[#allocation9 + $0x160] sm:$0xff] }
 0x6cf   :  { %v4654_v22 = vcombine.high %v2357_v13, %v2365_v15  ;;  %v4653_v30 = vcombine.low %v2357_v13, %v2365_v15  ;;  %v5379_v13 = vld [vmem:[#allocation12 + $0x440] sm:$0xff]  }
 0x6d0   :  { %v2328_v17 = vsub.f32 %v2315_v12, %v2327_v16  ;;  %v4649_v12 = vcombine.low %v2355_v58, %v2363_v59  ;;  %v2358_v16 = vld [vmem:[#allocation9 + $0x128] sm:$0xff]  ;;  %v5364_v58 = vld [vmem:[#allocation12 + $0x4e0] sm:$0xff]  }
 0x6d1   :  { %v5365_v59 = vld [vmem:[#allocation12 + $0x420] sm:$0xff]  }
 0x6d2   :  { %v2329_v18 = vmul.f32 %v2328_v17, %v2328_v17  ;;  %v5380_v15 = vld [vmem:[#allocation12 + $0x4c0] sm:$0xff]  }
 0x6d4   :  { %v2330_v19 = vsel %vm203_vm2, %v2329_v18, 0.0  ;;  %v4669_v18 = vcombine.low %v2373_v40, %v2381_v63  ;;  %v5371_v40 = vld [vmem:[#allocation12 + $0x450] sm:$0xff]  }
 0x6d5   :  { %2331 = vadd.xlane.f32.xlu1 %v2330_v19  ;;  %v4671_v19 = vcombine.low %v2374_v8, %v2382_v32  ;;  %v5372_v63 = vld [vmem:[#allocation12 + $0x4d0] sm:$0xff]  }
 0x6d6   :  { %v5373_v8 = vld [vmem:[#allocation12 + $0x410] sm:$0xff]  }
 0x6d7   :  { %v5374_v32 = vld [vmem:[#allocation12 + $0x490] sm:$0xff]  }
 0x75e   :  { %v2332_v51 = vpop.xlane.xlu1 %2331 }
 0x75f   :  { %v2333_v52 = vmul.f32 0.03125, %v2332_v51  ;;  %v5355_v51 = vld [vmem:[#allocation12 + $0x470] sm:$0xff]  }
 0x761   :  { %v2334_v27 = vadd.f32 1e-05, %v2333_v52  ;;  %v5356_v52 = vld [vmem:[#allocation12 + $0x4f0] sm:$0xff]  }
 0x763   :  { %5485 = vrsqrt.f32 %v2334_v27  ;;  %v5357_v27 = vld [vmem:[#allocation12 + $0x430] sm:$0xff]  }
 0x770   :  { %v5486_v54 = vpop.eup %5485 }
 0x771   :  { %v2336_v31 = vmul.f32 %v5486_v54, %v2328_v17  ;;  %v2366_v17 = vld [vmem:[#allocation9 + $0x168] sm:$0xff]  ;;  %v5358_v54 = vld [vmem:[#allocation12 + $0x4b0] sm:$0xff]  }
 0x772   :  { %v4656_v23 = vcombine.high %v2358_v16, %v2366_v17  ;;  %v4655_v34 = vcombine.low %v2358_v16, %v2366_v17  ;;  %v5381_v16 = vld [vmem:[#allocation12 + $0x400] sm:$0xff]  }
 0x773   :  { %v2343_v57 = vmul.f32 %v4643_v55, %v2336_v31  ;;  %v5360_v55 = vld [vmem:[#allocation12 + $0x4e8] sm:$0xff]   ;;  %v5382_v17 = vld [vmem:[#allocation12 + $0x480] sm:$0xff]  }
 0x774   :  { %v5361_v31 = vld [vmem:[#allocation12 + $0x428] sm:$0xff]  }
 0x775   :  { %v5912_v61 = vadd.f32 %v4644_v56, %v2343_v57  ;;  %v5362_v56 = vld [vmem:[#allocation12 + $0x4a8] sm:$0xff]   ;;  %v5363_v57 = vld [vmem:[#allocation12 + $0x460] sm:$0xff]  }
 0x777   :  { %v5916_v62 = vpack.c.bf16 %v5912_v61, %v5912_v61 }
 0x779   :  { %4677 = vmatmul.mubr.msk.bf16.vlgmr.msra.gmra.mxu0 %vm203_vm2, %v5916_v62  ;;  %4678 = vmatmul.mubr.msk.bf16.vlgmr.msra.gmra.mxu1 %vm203_vm2, %v5916_v62 }
 0x77a   :  { %2728 = vmatpush1.bf16.msra.mxu0 %v4665_v48  ;;  %2769 = vmatpush1.bf16.msra.mxu1 %v4667_v50  ;;  %v4659_v48 = vcombine.low %v2360_v41, %v2368_v42  ;;  %v5353_v50 = vld [vmem:[#allocation12 + $0x438] sm:$0xff]  }
 0x77b   :  { %2729 = vmatprep.subr.bf16.mxu0 %v4650_v1  ;;  %2770 = vmatprep.subr.bf16.mxu1 %v4652_v39  ;;  %v5369_v1 = vld [vmem:[#allocation12 + $0x418] sm:$0xff]  }
 0x77c   :  { %2747 = vmatprep.mubr.bf16.mxu0 %v5651_v37  ;;  %2788 = vmatprep.mubr.bf16.mxu1 %v5651_v37  ;;  %v5370_v39 = vld [vmem:[#allocation12 + $0x498] sm:$0xff]  }
 0x77e   :  { %2730 = vmatpush1.bf16.msra.mxu0 %v4649_v12  ;;  %2771 = vmatpush1.bf16.msra.mxu1 %v4651_v33  ;;  %v5375_v12 = vld [vmem:[#allocation12 + $0x448] sm:$0xff]  }
 0x77f   :  { %2809 = vmatprep.subr.bf16.mxu0 %v4670_v9  ;;  %2850 = vmatprep.subr.bf16.mxu1 %v4672_v10  ;;  %v5376_v33 = vld [vmem:[#allocation12 + $0x4c8] sm:$0xff]  }
 0x780   :  { %v5377_v9 = vld [vmem:[#allocation12 + $0x408] sm:$0xff]  }
 0x781   :  { %4679 = vmatmul.mubr.msk.bf16.vlgmr.msra.gmra.mxu0 %vm203_vm2, %v5916_v62  ;;  %4680 = vmatmul.mubr.msk.bf16.vlgmr.msra.gmra.mxu1 %vm203_vm2, %v5916_v62  ;;  %v5378_v10 = vld [vmem:[#allocation12 + $0x488] sm:$0xff]  }
 0x782   :  { %2810 = vmatpush1.bf16.msra.mxu0 %v4669_v18  ;;  %2851 = vmatpush1.bf16.msra.mxu1 %v4671_v19  ;;  %v5383_v18 = vld [vmem:[#allocation12 + $0x578] sm:$0xff]  }
 0x783   :  { %2811 = vmatprep.subr.bf16.mxu0 %v4654_v22  ;;  %2852 = vmatprep.subr.bf16.mxu1 %v4656_v23  ;;  %v5384_v19 = vld [vmem:[#allocation12 + $0x5f8] sm:$0xff]   ;;  %v5940_v22 = vld [vmem:[#allocation10 + $0x10] sm:$0xff] }
 0x784   :  { %2829 = vmatprep.mubr.bf16.mxu0 %v5651_v37  ;;  %2870 = vmatprep.mubr.bf16.mxu1 %v5651_v37  ;;  %v2393_v23 = vrot.slane %v5940_v22, %v5802_v3  ;;  %v2401_v24 = vrot.slane %v5940_v22, %v5805_v4  ;;  %v2397_v25 = vrot.slane %v5940_v22, %v5810_v6 }
 0x785   :  { %v2405_v28 = vrot.slane %v5940_v22, %v5813_v7 }
 0x786   :  { %2812 = vmatpush1.bf16.msra.mxu0 %v4653_v30  ;;  %2853 = vmatpush1.bf16.msra.mxu1 %v4655_v34 }
 0x787   :  { %2891 = vmatprep.subr.bf16.mxu0 %v4674_v35  ;;  %2932 = vmatprep.subr.bf16.mxu1 %v4676_v2 }
 0x789   :  { %4681 = vmatmul.mubr.msk.bf16.vlgmr.msra.gmra.mxu0 %vm203_vm2, %v5916_v62  ;;  %4682 = vmatmul.mubr.msk.bf16.vlgmr.msra.gmra.mxu1 %vm203_vm2, %v5916_v62 }
 0x78a   :  { %2892 = vmatpush1.bf16.msra.mxu0 %v4673_v43  ;;  %2933 = vmatpush1.bf16.msra.mxu1 %v4675_v44 }
 0x78b   :  { %2893 = vmatprep.subr.bf16.mxu0 %v4658_v45  ;;  %2934 = vmatprep.subr.bf16.mxu1 %v4660_v46 }
 0x78c   :  { %2911 = vmatprep.mubr.bf16.mxu0 %v5651_v37  ;;  %2952 = vmatprep.mubr.bf16.mxu1 %v5651_v37  ;;  %v5359_v37 = vld [vmem:[#allocation12 + $0x468] sm:$0xff]  }
 0x78e   :  { %2894 = vmatpush1.bf16.msra.mxu0 %v4657_v47  ;;  %2935 = vmatpush1.bf16.msra.mxu1 %v4659_v48 }
 0x78f   :  { %5004 = vmatprep.subr.bf16.mxu0 %v5351_v49  ;;  %5026 = vmatprep.subr.bf16.mxu1 %v5352_v5 }
 0x791   :  { %4683 = vmatmul.mubr.msk.bf16.vlgmr.msra.gmra.mxu0 %vm203_vm2, %v5916_v62  ;;  %4684 = vmatmul.mubr.msk.bf16.vlgmr.msra.gmra.mxu1 %vm203_vm2, %v5916_v62  ;;  %v5368_v62 = vld [vmem:[#allocation12 + $0x4d8] sm:$0xff]  }
 0x792   :  { %5005 = vmatpush3.bf16.msra.mxu0 %v5353_v50  ;;  %5027 = vmatpush3.bf16.msra.mxu1 %v5354_v14  ;;  %v2413_v14 = vrot.slane %v5940_v22, %v5824_v20 }
 0x793   :  { %5006 = vmatprep.subr.bf16.mxu0 %v5355_v51  ;;  %5028 = vmatprep.subr.bf16.mxu1 %v5356_v52  ;;  %v2421_v51 = vrot.slane %v5940_v22, %v5827_v21  ;;  %v5385_v52 = vld [vmem:[#allocation12 + $0x538] sm:$0xff]  }
 0x796   :  { %5007 = vmatpush3.bf16.msra.mxu0 %v5357_v27  ;;  %5029 = vmatpush3.bf16.msra.mxu1 %v5358_v54  ;;  %v5386_v27 = vld [vmem:[#allocation12 + $0x5b8] sm:$0xff]  }
 0x797   :  { %5008 = vmatprep.subr.bf16.mxu0 %v5359_v37  ;;  %5030 = vmatprep.subr.bf16.mxu1 %v5360_v55 }
 0x79a   :  { %5009 = vmatpush3.bf16.msra.mxu0 %v5361_v31  ;;  %5031 = vmatpush3.bf16.msra.mxu1 %v5362_v56  ;;  %v5387_v56 = vld [vmem:[#allocation12 + $0x570] sm:$0xff]  }
 0x79b   :  { %5010 = vmatprep.subr.bf16.mxu0 %v5363_v57  ;;  %5032 = vmatprep.subr.bf16.mxu1 %v5364_v58  ;;  %v5388_v57 = vld [vmem:[#allocation12 + $0x5f0] sm:$0xff]  }
 0x79e   :  { %5011 = vmatpush3.bf16.msra.mxu0 %v5365_v59  ;;  %5033 = vmatpush3.bf16.msra.mxu1 %v5366_v60 }
 0x79f   :  { %5012 = vmatprep.subr.bf16.mxu0 %v5367_v53  ;;  %5034 = vmatprep.subr.bf16.mxu1 %v5368_v62  ;;  %v5389_v62 = vld [vmem:[#allocation12 + $0x530] sm:$0xff]  }
 0x7a2   :  { %5013 = vmatpush3.bf16.msra.mxu0 %v5369_v1  ;;  %5035 = vmatpush3.bf16.msra.mxu1 %v5370_v39  ;;  %v5390_v1 = vld [vmem:[#allocation12 + $0x5b0] sm:$0xff]  }
 0x7a3   :  { %5014 = vmatprep.subr.bf16.mxu0 %v5371_v40  ;;  %5036 = vmatprep.subr.bf16.mxu1 %v5372_v63  ;;  %v5391_v63 = vld [vmem:[#allocation12 + $0x568] sm:$0xff]  }
 0x7a6   :  { %5015 = vmatpush3.bf16.msra.mxu0 %v5373_v8  ;;  %5037 = vmatpush3.bf16.msra.mxu1 %v5374_v32  ;;  %v5392_v8 = vld [vmem:[#allocation12 + $0x5e8] sm:$0xff]  }
 0x7a7   :  { %5016 = vmatprep.subr.bf16.mxu0 %v5375_v12  ;;  %5038 = vmatprep.subr.bf16.mxu1 %v5376_v33 }
 0x7aa   :  { %5017 = vmatpush3.bf16.msra.mxu0 %v5377_v9  ;;  %5039 = vmatpush3.bf16.msra.mxu1 %v5378_v10 }
 0x7ab   :  { %5018 = vmatprep.subr.bf16.mxu0 %v5379_v13  ;;  %5040 = vmatprep.subr.bf16.mxu1 %v5380_v15  ;;  %v5393_v15 = vld [vmem:[#allocation12 + $0x528] sm:$0xff]  }
 0x7ae   :  { %5019 = vmatpush3.bf16.msra.mxu0 %v5381_v16  ;;  %5041 = vmatpush3.bf16.msra.mxu1 %v5382_v17  ;;  %v5394_v16 = vld [vmem:[#allocation12 + $0x5a8] sm:$0xff]  }
 0x7af   :  { %5048 = vmatprep.subr.bf16.mxu0 %v5383_v18  ;;  %5070 = vmatprep.subr.bf16.mxu1 %v5384_v19  ;;  %v5395_v19 = vld [vmem:[#allocation12 + $0x560] sm:$0xff]  }
 0x839   :  { %v2667_v29 = vpop.f32.mrf.mxu0  ;;  %v2708_v30 = vpop.f32.mrf.mxu1 }
 0x83a   :  { %v2668_v34 = vadd.f32 %v2667_v29, %v2393_v23  ;;  %v2709_v35 = vadd.f32 %v2708_v30, %v2401_v24  ;;  %v5396_v23 = vld [vmem:[#allocation12 + $0x5e0] sm:$0xff]   ;;  %v5962_v30 = vld [vmem:[#allocation10 + $0x18] sm:$0xff] }
 0x83b   :  { %v2669_v2 = vpop.f32.mrf.mxu0  ;;  %v2710_v36 = vpop.f32.mrf.mxu1  ;;  %v5398_v29 = vld [vmem:[#allocation12 + $0x5a0] sm:$0xff]  }
 0x83c   :  { %v2670_v38 = vadd.f32 %v2669_v2, %v2397_v25  ;;  %v2711_v41 = vadd.f32 %v2710_v36, %v2405_v28  ;;  %v2961_v42 = vmax.f32 %v2668_v34, 0.0  ;;  %v2963_v43 = vmax.f32 %v2709_v35, 0.0  ;;  %v5397_v28 = vld [vmem:[#allocation12 + $0x520] sm:$0xff]   ;;  %v5399_v2 = vld [vmem:[#allocation12 + $0x558] sm:$0xff]  }
 0x83d   :  { %v2671_v44 = vpop.f32.mrf.mxu0  ;;  %v2712_v45 = vpop.f32.mrf.mxu1  ;;  %v5400_v36 = vld [vmem:[#allocation12 + $0x5d8] sm:$0xff]  }
 0x83e   :  { %v2962_v46 = vmax.f32 %v2670_v38, 0.0  ;;  %v2964_v47 = vmax.f32 %v2711_v41, 0.0  ;;  %v2977_v54 = vpack.c.bf16 %v2961_v42, %v2961_v42  ;;  %v2979_v37 = vpack.c.bf16 %v2963_v43, %v2963_v43  ;;  %v5401_v43 = vld [vmem:[#allocation12 + $0x518] sm:$0xff]  }
 0x83f   :  { %v2672_v48 = vpop.f32.mrf.mxu0  ;;  %v2713_v49 = vpop.f32.mrf.mxu1  ;;  %v2449_v38 = vrot.slane %v5962_v30, %v5842_v11  ;;  %v5402_v44 = vld [vmem:[#allocation12 + $0x598] sm:$0xff]  }
 0x840   :  { %v2978_v5 = vpack.c.bf16 %v2962_v46, %v2962_v46  ;;  %v2980_v50 = vpack.c.bf16 %v2964_v47, %v2964_v47  ;;  %v5403_v47 = vld [vmem:[#allocation12 + $0x550] sm:$0xff]  }
 0x841   :  { %v5954_v55 = vpop.f32.mrf.mxu0  ;;  %v5956_v31 = vpop.f32.mrf.mxu1  ;;  %v5404_v48 = vld [vmem:[#allocation12 + $0x5d0] sm:$0xff]  }
 0x842   :  { %4058 = vmatprep.mubr.bf16.mxu0 %v2978_v5  ;;  %4098 = vmatprep.mubr.bf16.mxu1 %v2980_v50 }
 0x843   :  { %v2751_v58 = vpop.f32.mrf.mxu0  ;;  %v2792_v59 = vpop.f32.mrf.mxu1  ;;  %4059 = vmatmul.mubr.bf16.vlgmr.msra.gmra.mxu0 %v2977_v54  ;;  %4099 = vmatmul.mubr.bf16.vlgmr.msra.gmra.mxu1 %v2979_v37 }
 0x844   :  { %v2752_v60 = vadd.f32 %v2751_v58, %v2413_v14  ;;  %v2793_v53 = vadd.f32 %v2792_v59, %v2421_v51  ;;  %5049 = vmatpush3.bf16.msra.mxu0 %v5385_v52  ;;  %5071 = vmatpush3.bf16.msra.mxu1 %v5386_v27  ;;  %v5405_v14 = vld [vmem:[#allocation12 + $0x510] sm:$0xff]   ;;  %v2409_v52 = vrot.slane %v5940_v22, %v5849_v26 }
 0x845   :  { %v2753_v39 = vpop.f32.mrf.mxu0  ;;  %v2794_v40 = vpop.f32.mrf.mxu1  ;;  %5050 = vmatprep.subr.bf16.mxu0 %v5387_v56  ;;  %5072 = vmatprep.subr.bf16.mxu1 %v5388_v57  ;;  %v5406_v51 = vld [vmem:[#allocation12 + $0x590] sm:$0xff]   ;;  %v2417_v27 = vrot.slane %v5940_v22, %v5842_v11  ;;  %v5407_v56 = vld [vmem:[#allocation12 + $0x548] sm:$0xff]   ;;  %v2429_v58 = vrot.slane %v5962_v30, %v5810_v6  ;;  %v2437_v59 = vrot.slane %v5962_v30, %v5813_v7  ;;  %v5413_v6 = vld [vmem:[#allocation12 + $0x500] sm:$0xff]  }
 0x846   :  { %v2966_v32 = vmax.f32 %v2752_v60, 0.0  ;;  %v2968_v12 = vmax.f32 %v2793_v53, 0.0  ;;  %v5408_v57 = vld [vmem:[#allocation12 + $0x5c8] sm:$0xff]   ;;  %v2750_v11 = vadd.f32 %v5954_v55, %v2409_v52  ;;  %v5411_v39 = vld [vmem:[#allocation12 + $0x540] sm:$0xff]   ;;  %v5437_v52 = vld [vmem:[#allocation12 + $0x610] sm:$0xff]  }
 0x847   :  { %v2754_v33 = vpop.f32.mrf.mxu0  ;;  %v2795_v9 = vpop.f32.mrf.mxu1  ;;  %v2791_v22 = vadd.f32 %v5956_v31, %v2417_v27  ;;  %v5412_v40 = vld [vmem:[#allocation12 + $0x5c0] sm:$0xff]   ;;  %v5417_v31 = vld [vmem:[#allocation12 + $0x638] sm:$0xff]   ;;  %v2425_v27 = vrot.slane %v5962_v30, %v5802_v3  ;;  %v5442_v3 = vld [vmem:[#allocation12 + $0x688] sm:$0xff]  }
 0x848   :  { %v2982_v10 = vpack.c.bf16 %v2966_v32, %v2966_v32  ;;  %v2984_v13 = vpack.c.bf16 %v2968_v12, %v2968_v12  ;;  %5051 = vmatpush3.bf16.msra.mxu0 %v5389_v62  ;;  %5073 = vmatpush3.bf16.msra.mxu1 %v5390_v1  ;;  %v5409_v62 = vld [vmem:[#allocation12 + $0x508] sm:$0xff]   ;;  %v5414_v7 = vld [vmem:[#allocation12 + $0x580] sm:$0xff]   ;;  %v2965_v32 = vmax.f32 %v2750_v11, 0.0  ;;  %v5415_v33 = vld [vmem:[#allocation12 + $0x678] sm:$0xff]  }
 0x849   :  { %v5958_v17 = vpop.f32.mrf.mxu0  ;;  %v5960_v18 = vpop.f32.mrf.mxu1  ;;  %5052 = vmatprep.subr.bf16.mxu0 %v5391_v63  ;;  %5074 = vmatprep.subr.bf16.mxu1 %v5392_v8  ;;  %v5410_v1 = vld [vmem:[#allocation12 + $0x588] sm:$0xff]   ;;  %v2967_v12 = vmax.f32 %v2791_v22, 0.0  ;;  %v5416_v9 = vld [vmem:[#allocation12 + $0x6f8] sm:$0xff]  }
 0x84a   :  { %4138 = vmatprep.mubr.bf16.mxu0 %v2982_v10  ;;  %4178 = vmatprep.mubr.bf16.mxu1 %v2984_v13  ;;  %v2981_v13 = vpack.c.bf16 %v2965_v32, %v2965_v32 }
 0x84b   :  { %v2833_v24 = vpop.f32.mrf.mxu0  ;;  %v2874_v25 = vpop.f32.mrf.mxu1 }
 0x84c   :  { %5053 = vmatpush3.bf16.msra.mxu0 %v5393_v15  ;;  %5075 = vmatpush3.bf16.msra.mxu1 %v5394_v16  ;;  %v2834_v63 = vadd.f32 %v2833_v24, %v2429_v58  ;;  %v2875_v8 = vadd.f32 %v2874_v25, %v2437_v59  ;;  %v2983_v15 = vpack.c.bf16 %v2967_v12, %v2967_v12  ;;  %v5418_v16 = vld [vmem:[#allocation12 + $0x6b8] sm:$0xff]   ;;  %v5420_v24 = vld [vmem:[#allocation12 + $0x6f0] sm:$0xff]  }
 0x84d   :  { %v2835_v34 = vpop.f32.mrf.mxu0  ;;  %v2876_v35 = vpop.f32.mrf.mxu1  ;;  %5054 = vmatprep.subr.bf16.mxu0 %v5395_v19  ;;  %5076 = vmatprep.subr.bf16.mxu1 %v5396_v23  ;;  %v5419_v23 = vld [vmem:[#allocation12 + $0x670] sm:$0xff]   ;;  %v2445_v58 = vrot.slane %v5962_v30, %v5824_v20  ;;  %v2453_v59 = vrot.slane %v5962_v30, %v5827_v21  ;;  %v5445_v20 = vld [vmem:[#allocation12 + $0x600] sm:$0xff]  }
 0x84e   :  { %v2970_v10 = vmax.f32 %v2834_v63, 0.0  ;;  %v2972_v55 = vmax.f32 %v2875_v8, 0.0  ;;  %v5423_v34 = vld [vmem:[#allocation12 + $0x668] sm:$0xff]   ;;  %v5446_v21 = vld [vmem:[#allocation12 + $0x680] sm:$0xff]   ;;  %v5448_v63 = vld [vmem:[#allocation12 + $0x7f8] sm:$0xff]  }
 0x84f   :  { %v2836_v41 = vpop.f32.mrf.mxu0  ;;  %v2877_v42 = vpop.f32.mrf.mxu1  ;;  %v5424_v35 = vld [vmem:[#allocation12 + $0x6e8] sm:$0xff]  }
 0x850   :  { %5055 = vmatpush3.bf16.msra.mxu0 %v5397_v28  ;;  %5077 = vmatpush3.bf16.msra.mxu1 %v5398_v29  ;;  %v2986_v19 = vpack.c.bf16 %v2970_v10, %v2970_v10  ;;  %v2988_v25 = vpack.c.bf16 %v2972_v55, %v2972_v55  ;;  %v5421_v28 = vld [vmem:[#allocation12 + $0x630] sm:$0xff]   ;;  %v5428_v41 = vld [vmem:[#allocation12 + $0x6e0] sm:$0xff]  }
 0x851   :  { %v5966_v45 = vpop.f32.mrf.mxu0  ;;  %v2954_v46 = vpop.f32.mrf.mxu1  ;;  %5056 = vmatprep.subr.bf16.mxu0 %v5399_v2  ;;  %5078 = vmatprep.subr.bf16.mxu1 %v5400_v36  ;;  %v5422_v29 = vld [vmem:[#allocation12 + $0x6b0] sm:$0xff]   ;;  %v5425_v2 = vld [vmem:[#allocation12 + $0x628] sm:$0xff]   ;;  %v5429_v42 = vld [vmem:[#allocation12 + $0x620] sm:$0xff]  }
 0x852   :  { %v5968_v49 = vadd.f32 %v2954_v46, %v2449_v38  ;;  %v5426_v36 = vld [vmem:[#allocation12 + $0x6a8] sm:$0xff]   ;;  %v5427_v38 = vld [vmem:[#allocation12 + $0x660] sm:$0xff]   ;;  %v5432_v46 = vld [vmem:[#allocation12 + $0x6d8] sm:$0xff]  }
 0x853   :  { %v5970_v5 = vpop.f32.mrf.mxu0  ;;  %v5972_v50 = vpop.f32.mrf.mxu1  ;;  %v5453_v10 = vld [vmem:[#allocation12 + $0x730] sm:$0xff]  }
 0x854   :  { %5057 = vmatpush3.bf16.msra.mxu0 %v5401_v43  ;;  %5079 = vmatpush3.bf16.msra.mxu1 %v5402_v44  ;;  %v5430_v43 = vld [vmem:[#allocation12 + $0x6a0] sm:$0xff]   ;;  %v5431_v44 = vld [vmem:[#allocation12 + $0x658] sm:$0xff]   ;;  %v2916_v11 = vadd.f32 %v5970_v5, %v2445_v58  ;;  %v2957_v22 = vadd.f32 %v5972_v50, %v2453_v59  ;;  %v5451_v50 = vld [vmem:[#allocation12 + $0x770] sm:$0xff]  }
 0x855   :  { %v2917_v54 = vpop.f32.mrf.mxu0  ;;  %v2958_v37 = vpop.f32.mrf.mxu1  ;;  %5058 = vmatprep.subr.bf16.mxu0 %v5403_v47  ;;  %5080 = vmatprep.subr.bf16.mxu1 %v5404_v48  ;;  %v5433_v47 = vld [vmem:[#allocation12 + $0x618] sm:$0xff]   ;;  %v5454_v55 = vld [vmem:[#allocation12 + $0x7b0] sm:$0xff]  }
 0x856   :  { %v5434_v48 = vld [vmem:[#allocation12 + $0x698] sm:$0xff]   ;;  %v5438_v54 = vld [vmem:[#allocation12 + $0x690] sm:$0xff]   ;;  %v5439_v37 = vld [vmem:[#allocation12 + $0x648] sm:$0xff]   ;;  %v2974_v8 = vmax.f32 %v2916_v11, 0.0 }
 0x857   :  { %v2918_v60 = vpop.f32.mrf.mxu0  ;;  %v2959_v53 = vpop.f32.mrf.mxu1  ;;  %v5450_v5 = vld [vmem:[#allocation12 + $0x7b8] sm:$0xff]  }
 0x858   :  { %5059 = vmatpush3.bf16.msra.mxu0 %v5405_v14  ;;  %5081 = vmatpush3.bf16.msra.mxu1 %v5406_v51  ;;  %v5435_v14 = vld [vmem:[#allocation12 + $0x650] sm:$0xff]   ;;  %v5441_v60 = vld [vmem:[#allocation12 + $0x608] sm:$0xff]   ;;  %v2832_v53 = vadd.f32 %v5958_v17, %v2425_v27  ;;  %v2990_v12 = vpack.c.bf16 %v2974_v8, %v2974_v8 }
 0x859   :  { %5060 = vmatprep.subr.bf16.mxu0 %v5407_v56  ;;  %5082 = vmatprep.subr.bf16.mxu1 %v5408_v57  ;;  %v5436_v51 = vld [vmem:[#allocation12 + $0x6d0] sm:$0xff]   ;;  %v2433_v56 = vrot.slane %v5962_v30, %v5805_v4  ;;  %v5440_v57 = vld [vmem:[#allocation12 + $0x6c8] sm:$0xff]   ;;  %v5444_v4 = vld [vmem:[#allocation12 + $0x6c0] sm:$0xff]  }
 0x85c   :  { %5061 = vmatpush3.bf16.msra.mxu0 %v5409_v62  ;;  %5083 = vmatpush3.bf16.msra.mxu1 %v5410_v1  ;;  %v5443_v62 = vld [vmem:[#allocation12 + $0x640] sm:$0xff]   ;;  %v2873_v1 = vadd.f32 %v5960_v18, %v2433_v56  ;;  %v5449_v18 = vld [vmem:[#allocation12 + $0x738] sm:$0xff]  }
 0x85d   :  { %5062 = vmatprep.subr.bf16.mxu0 %v5411_v39  ;;  %5084 = vmatprep.subr.bf16.mxu1 %v5412_v40  ;;  %v2969_v39 = vmax.f32 %v2832_v53, 0.0  ;;  %v5447_v40 = vld [vmem:[#allocation12 + $0x778] sm:$0xff]  }
 0x85e   :  { %v2971_v17 = vmax.f32 %v2873_v1, 0.0 }
 0x860   :  { %5063 = vmatpush3.bf16.msra.mxu0 %v5413_v6  ;;  %5085 = vmatpush3.bf16.msra.mxu1 %v5414_v7  ;;  %v2976_v6 = vmax.f32 %v2957_v22, 0.0  ;;  %v2985_v7 = vpack.c.bf16 %v2969_v39, %v2969_v39  ;;  %v2987_v32 = vpack.c.bf16 %v2971_v17, %v2971_v17 }
 0x861   :  { %5092 = vmatprep.subr.bf16.mxu0 %v5415_v33  ;;  %5114 = vmatprep.subr.bf16.mxu1 %v5416_v9  ;;  %v5452_v33 = vld [vmem:[#allocation12 + $0x7f0] sm:$0xff]  }
 0x862   :  { %v2992_v9 = vpack.c.bf16 %v2976_v6, %v2976_v6 }
 0x863   :  { %4139 = vmatmul.mubr.bf16.vlgmr.msra.gmra.mxu0 %v2981_v13  ;;  %4179 = vmatmul.mubr.bf16.vlgmr.msra.gmra.mxu1 %v2983_v15  ;;  %v5456_v13 = vld [vmem:[#allocation12 + $0x7e8] sm:$0xff]  }
 0x864   :  { %5093 = vmatpush3.bf16.msra.mxu0 %v5417_v31  ;;  %4218 = vmatprep.mubr.bf16.mxu0 %v2986_v19  ;;  %v5455_v31 = vld [vmem:[#allocation12 + $0x768] sm:$0xff]   ;;  %v5459_v19 = vld [vmem:[#allocation12 + $0x760] sm:$0xff]  }
 0x865   :  { %5115 = vmatpush3.bf16.msra.mxu1 %v5418_v16  ;;  %4258 = vmatprep.mubr.bf16.mxu1 %v2988_v25  ;;  %v5457_v15 = vld [vmem:[#allocation12 + $0x728] sm:$0xff]   ;;  %v5462_v25 = vld [vmem:[#allocation12 + $0x7a0] sm:$0xff]  }
 0x866   :  { %5094 = vmatprep.subr.bf16.mxu0 %v5419_v23  ;;  %5116 = vmatprep.subr.bf16.mxu1 %v5420_v24  ;;  %v5458_v16 = vld [vmem:[#allocation12 + $0x7a8] sm:$0xff]   ;;  %v5460_v23 = vld [vmem:[#allocation12 + $0x7e0] sm:$0xff]  }
 0x867   :  { %v5461_v24 = vld [vmem:[#allocation12 + $0x720] sm:$0xff]  }
 0x868   :  { %5095 = vmatpush3.bf16.msra.mxu0 %v5421_v28  ;;  %v5463_v28 = vld [vmem:[#allocation12 + $0x758] sm:$0xff]  }
 0x869   :  { %5117 = vmatpush3.bf16.msra.mxu1 %v5422_v29  ;;  %5096 = vmatprep.subr.bf16.mxu0 %v5423_v34  ;;  %v5464_v29 = vld [vmem:[#allocation12 + $0x7d8] sm:$0xff]  }
 0x86a   :  { %5118 = vmatprep.subr.bf16.mxu1 %v5424_v35  ;;  %v5465_v34 = vld [vmem:[#allocation12 + $0x718] sm:$0xff]  }
 0x86b   :  { %v5466_v35 = vld [vmem:[#allocation12 + $0x798] sm:$0xff]  }
 0x86c   :  { %5097 = vmatpush3.bf16.msra.mxu0 %v5425_v2  ;;  %v5467_v2 = vld [vmem:[#allocation12 + $0x750] sm:$0xff]  }
 0x86d   :  { %5119 = vmatpush3.bf16.msra.mxu1 %v5426_v36  ;;  %5098 = vmatprep.subr.bf16.mxu0 %v5427_v38  ;;  %v5468_v36 = vld [vmem:[#allocation12 + $0x7d0] sm:$0xff]  }
 0x86e   :  { %5120 = vmatprep.subr.bf16.mxu1 %v5428_v41  ;;  %v5469_v38 = vld [vmem:[#allocation12 + $0x710] sm:$0xff]   ;;  %v2441_v41 = vrot.slane %v5962_v30, %v5849_v26  ;;  %v5478_v26 = vld [vmem:[#allocation12 + $0x780] sm:$0xff]   ;;  %v2975_v30 = vmax.f32 %v5968_v49, 0.0 }
 0x870   :  { %5099 = vmatpush3.bf16.msra.mxu0 %v5429_v42  ;;  %v5470_v42 = vld [vmem:[#allocation12 + $0x790] sm:$0xff]  }
 0x871   :  { %5121 = vmatpush3.bf16.msra.mxu1 %v5430_v43  ;;  %5100 = vmatprep.subr.bf16.mxu0 %v5431_v44  ;;  %v5471_v43 = vld [vmem:[#allocation12 + $0x748] sm:$0xff]  }
 0x872   :  { %5122 = vmatprep.subr.bf16.mxu1 %v5432_v46  ;;  %v5472_v44 = vld [vmem:[#allocation12 + $0x7c8] sm:$0xff]  }
 0x873   :  { %v5473_v46 = vld [vmem:[#allocation12 + $0x708] sm:$0xff]  }
 0x874   :  { %5101 = vmatpush3.bf16.msra.mxu0 %v5433_v47  ;;  %v2914_v47 = vadd.f32 %v5966_v45, %v2441_v41  ;;  %v2991_v45 = vpack.c.bf16 %v2975_v30, %v2975_v30 }
 0x875   :  { %5123 = vmatpush3.bf16.msra.mxu1 %v5434_v48  ;;  %5102 = vmatprep.subr.bf16.mxu0 %v5435_v14  ;;  %v5474_v48 = vld [vmem:[#allocation12 + $0x788] sm:$0xff]   ;;  %v5475_v14 = vld [vmem:[#allocation12 + $0x740] sm:$0xff]  }
 0x876   :  { %5124 = vmatprep.subr.bf16.mxu1 %v5436_v51  ;;  %v5476_v51 = vld [vmem:[#allocation12 + $0x7c0] sm:$0xff]   ;;  %v2973_v27 = vmax.f32 %v2914_v47, 0.0 }
 0x878   :  { %5103 = vmatpush3.bf16.msra.mxu0 %v5437_v52  ;;  %v5477_v52 = vld [vmem:[#allocation12 + $0x700] sm:$0xff]  }
 0x879   :  { %5125 = vmatpush3.bf16.msra.mxu1 %v5438_v54  ;;  %5104 = vmatprep.subr.bf16.mxu0 %v5439_v37  ;;  %v2989_v54 = vpack.c.bf16 %v2973_v27, %v2973_v27  ;;  %v5480_v27 = vld [vmem:[%s6044_s13] sm:$0xff]  }
 0x87a   :  { %5126 = vmatprep.subr.bf16.mxu1 %v5440_v57  ;;  %v4686_v57 = vld [vmem:[%s6043_s12 + $0x1] ss:$0 sm:$0xff] }
 0x87c   :  { %5105 = vmatpush3.bf16.msra.mxu0 %v5441_v60 }
 0x87d   :  { %5127 = vmatpush3.bf16.msra.mxu1 %v5442_v3  ;;  %5106 = vmatprep.subr.bf16.mxu0 %v5443_v62 }
 0x87e   :  { %5128 = vmatprep.subr.bf16.mxu1 %v5444_v4 }
 0x880   :  { %5107 = vmatpush3.bf16.msra.mxu0 %v5445_v20 }
 0x881   :  { %5129 = vmatpush3.bf16.msra.mxu1 %v5446_v21  ;;  %5136 = vmatprep.subr.bf16.mxu0 %v5447_v40 }
 0x882   :  { %5158 = vmatprep.subr.bf16.mxu1 %v5448_v63 }
 0x883   :  { %4219 = vmatmul.mubr.bf16.vlgmr.msra.gmra.mxu0 %v2985_v7 }
 0x884   :  { %4259 = vmatmul.mubr.bf16.vlgmr.msra.gmra.mxu1 %v2987_v32  ;;  %5137 = vmatpush3.bf16.msra.mxu0 %v5449_v18 }
 0x885   :  { %4298 = vmatprep.mubr.bf16.mxu0 %v2990_v12  ;;  %5159 = vmatpush3.bf16.msra.mxu1 %v5450_v5 }
 0x886   :  { %4338 = vmatprep.mubr.bf16.mxu1 %v2992_v9  ;;  %5138 = vmatprep.subr.bf16.mxu0 %v5451_v50 }
 0x887   :  { %5160 = vmatprep.subr.bf16.mxu1 %v5452_v33 }
 0x888   :  { %5139 = vmatpush3.bf16.msra.mxu0 %v5453_v10 }
 0x889   :  { %5161 = vmatpush3.bf16.msra.mxu1 %v5454_v55  ;;  %5140 = vmatprep.subr.bf16.mxu0 %v5455_v31 }
 0x88a   :  { %5162 = vmatprep.subr.bf16.mxu1 %v5456_v13 }
 0x88c   :  { %5141 = vmatpush3.bf16.msra.mxu0 %v5457_v15 }
 0x88d   :  { %5163 = vmatpush3.bf16.msra.mxu1 %v5458_v16  ;;  %5142 = vmatprep.subr.bf16.mxu0 %v5459_v19 }
 0x88e   :  { %5164 = vmatprep.subr.bf16.mxu1 %v5460_v23 }
 0x890   :  { %5143 = vmatpush3.bf16.msra.mxu0 %v5461_v24 }
 0x891   :  { %5165 = vmatpush3.bf16.msra.mxu1 %v5462_v25  ;;  %5144 = vmatprep.subr.bf16.mxu0 %v5463_v28 }
 0x892   :  { %5166 = vmatprep.subr.bf16.mxu1 %v5464_v29 }
 0x894   :  { %5145 = vmatpush3.bf16.msra.mxu0 %v5465_v34 }
 0x895   :  { %5167 = vmatpush3.bf16.msra.mxu1 %v5466_v35  ;;  %5146 = vmatprep.subr.bf16.mxu0 %v5467_v2 }
 0x896   :  { %5168 = vmatprep.subr.bf16.mxu1 %v5468_v36 }
 0x898   :  { %5147 = vmatpush3.bf16.msra.mxu0 %v5469_v38 }
 0x899   :  { %5169 = vmatpush3.bf16.msra.mxu1 %v5470_v42  ;;  %5148 = vmatprep.subr.bf16.mxu0 %v5471_v43 }
 0x89a   :  { %5170 = vmatprep.subr.bf16.mxu1 %v5472_v44 }
 0x89c   :  { %5149 = vmatpush3.bf16.msra.mxu0 %v5473_v46 }
 0x89d   :  { %5171 = vmatpush3.bf16.msra.mxu1 %v5474_v48  ;;  %5150 = vmatprep.subr.bf16.mxu0 %v5475_v14 }
 0x89e   :  { %5172 = vmatprep.subr.bf16.mxu1 %v5476_v51 }
 0x8a0   :  { %5151 = vmatpush3.bf16.msra.mxu0 %v5477_v52  ;;  %v5479_v52 = vld [vmem:[%s6044_s13 + $0x8] sm:$0xff]  }
 0x8a1   :  { %5173 = vmatpush3.bf16.msra.mxu1 %v5478_v26  ;;  %5197 = vmatprep.subr.bf16.mxu0 %v5649_v0 }
 0x8a3   :  { %4299 = vmatmul.mubr.bf16.vlgmr.msra.gmra.mxu0 %v2989_v54 }
 0x8a4   :  { %4339 = vmatmul.mubr.bf16.vlgmr.msra.gmra.mxu1 %v2991_v45  ;;  %5201 = vmatprep.mubr.msk.bf16.mxu0 %vm5650_vm0, %v5649_v0  ;;  %v4817_v45 = vld [vmem:[%s6038_s7 + $0x1] ss:$0 sm:$0xff] }
 0x8a5   :  { %5198 = vmatpush3.bf16.msra.mxu0 %v5479_v52 }
 0x8a6   :  { %5199 = vmatprep.subr.bf16.mxu0 %v5649_v0 }
 0x8a9   :  { %5200 = vmatpush3.bf16.msra.mxu0 %v5480_v27 }
 0x903   :  { %v5020_v37 = vpop.f32.mrf.mxu0  ;;  %v5042_v56 = vpop.f32.mrf.mxu1 }
 0x905   :  { %v5021_v58 = vpop.f32.mrf.mxu0  ;;  %v5043_v49 = vpop.f32.mrf.mxu1 }
 0x906   :  { %v5022_v59 = vadd.f32 %v5021_v58, %v5020_v37  ;;  %v5044_v60 = vadd.f32 %v5043_v49, %v5042_v56  ;;  %v4818_v56 = vld [vmem:[%s6039_s8 + $0x1] ss:$0 sm:$0xff]  ;;  %v4819_v49 = vld [vmem:[%s6045_s14] ss:$0 sm:$0xff] }
 0x907   :  { %v5023_v53 = vpop.f32.mrf.mxu0  ;;  %v5045_v3 = vpop.f32.mrf.mxu1 }
 0x908   :  { %v4061_v62 = vadd.f32 %v5022_v59, %v4686_v57 }
 0x909   :  { %v5024_v1 = vpop.f32.mrf.mxu0  ;;  %v5046_v4 = vpop.f32.mrf.mxu1 }
 0x90a   :  { %v4101_v11 = vadd.f32 %v5044_v60, %v4061_v62 }
 0x923   :  { %v5064_v22 = vpop.f32.mrf.mxu0  ;;  %v5086_v20 = vpop.f32.mrf.mxu1 }
 0x925   :  { %v5065_v39 = vpop.f32.mrf.mxu0  ;;  %v5087_v21 = vpop.f32.mrf.mxu1 }
 0x926   :  { %v5066_v9 = vadd.f32 %v5065_v39, %v5064_v22  ;;  %v5088_v55 = vadd.f32 %v5087_v21, %v5086_v20 }
 0x927   :  { %v5067_v40 = vpop.f32.mrf.mxu0  ;;  %v5089_v17 = vpop.f32.mrf.mxu1 }
 0x928   :  { %v4141_v10 = vadd.f32 %v5066_v9, %v4101_v11 }
 0x929   :  { %v5068_v63 = vpop.f32.mrf.mxu0  ;;  %v5090_v8 = vpop.f32.mrf.mxu1 }
 0x92a   :  { %v4181_v13 = vadd.f32 %v5088_v55, %v4141_v10 }
 0x943   :  { %v5108_v6 = vpop.f32.mrf.mxu0 }
 0x944   :  { %v5130_v18 = vpop.f32.mrf.mxu1 }
 0x945   :  { %v5109_v7 = vpop.f32.mrf.mxu0 }
 0x946   :  { %v5131_v5 = vpop.f32.mrf.mxu1  ;;  %v5110_v31 = vadd.f32 %v5109_v7, %v5108_v6 }
 0x947   :  { %v5111_v32 = vpop.f32.mrf.mxu0  ;;  %v5132_v19 = vadd.f32 %v5131_v5, %v5130_v18 }
 0x948   :  { %v5133_v50 = vpop.f32.mrf.mxu1  ;;  %v4221_v15 = vadd.f32 %v5110_v31, %v4181_v13 }
 0x949   :  { %v5112_v12 = vpop.f32.mrf.mxu0 }
 0x94a   :  { %v5134_v33 = vpop.f32.mrf.mxu1  ;;  %v4261_v25 = vadd.f32 %v5132_v19, %v4221_v15 }
 0x963   :  { %v5152_v16 = vpop.f32.mrf.mxu0 }
 0x964   :  { %v5174_v23 = vpop.f32.mrf.mxu1 }
 0x965   :  { %v5153_v24 = vpop.f32.mrf.mxu0 }
 0x966   :  { %v5154_v28 = vadd.f32 %v5153_v24, %v5152_v16  ;;  %v5175_v29 = vpop.f32.mrf.mxu1 }
 0x967   :  { %v5155_v34 = vpop.f32.mrf.mxu0  ;;  %v5176_v2 = vadd.f32 %v5175_v29, %v5174_v23 }
 0x968   :  { %v4301_v35 = vadd.f32 %v5154_v28, %v4261_v25  ;;  %v5177_v36 = vpop.f32.mrf.mxu1 }
 0x969   :  { %v5156_v38 = vpop.f32.mrf.mxu0 }
 0x96a   :  { %v4341_v41 = vadd.f32 %v5176_v2, %v4301_v35  ;;  %v5178_v42 = vpop.f32.mrf.mxu1 }
 0x96c   :  { %v4346_v43 = vadd.f32 %v4341_v41, %v5912_v61 }
 0x96e   :  { %v4351_v44 = vsel %vm203_vm2, %v4346_v43, 0.0 }
 0x96f   :  { %4352 = vadd.xlane.f32.xlu0 %v4351_v44 }
 0x9f8   :  { %v4353_v46 = vpop.xlane.xlu0 %4352 }
 0x9f9   :  { %v4354_v47 = vmul.f32 0.03125, %v4353_v46 }
 0x9fb   :  { %v4355_v48 = vsub.f32 %v4346_v43, %v4354_v47 }
 0x9fd   :  { %v4356_v14 = vmul.f32 %v4355_v48, %v4355_v48 }
 0x9ff   :  { %v4357_v51 = vsel %vm203_vm2, %v4356_v14, 0.0 }
 0xa00   :  { %4358 = vadd.xlane.f32.xlu1 %v4357_v51 }
 0xa89   :  { %v4359_v61 = vpop.xlane.xlu1 %4358 }
 0xa8a   :  { %v4360_v26 = vmul.f32 0.03125, %v4359_v61 }
 0xa8c   :  { %v4361_v30 = vadd.f32 1e-05, %v4360_v26 }
 0xa8e   :  { %5487 = vrsqrt.f32 %v4361_v30 }
 0xa9b   :  { %v5488_v54 = vpop.eup %5487 }
 0xa9c   :  { %v4363_v37 = vmul.f32 %v5488_v54, %v4355_v48 }
 0xa9e   :  { %v4370_v57 = vmul.f32 %v4817_v45, %v4363_v37 }
 0xaa0   :  { %v4377_v58 = vadd.f32 %v4818_v56, %v4370_v57 }
 0xaa2   :  { %4446 = vrot.lane.b32.xlu0 %v4377_v58, %s5641_s18  ;;  %v4378_v0 = vpack.c.bf16 %v4377_v58, %v4377_v58 }
 0xaa4   :  { %5202 = vmatmul.mubr.msk.bf16.vlgmr.msra.gmra.mxu0 %vm203_vm2, %v4378_v0 }
 0xb14   :  { %v4447_v53 = vpop.permute.xlu0 %4446 }
 0xb64   :  { %v4439_v59 = vpop.f32.mrf.mxu0 }
 0xb65   :  { %v4440_v60 = vadd.f32 %v4819_v49, %v4439_v59 }
 0xb66   :  { %v5203_v3 = vpop.f32.mrf.mxu0 }
 0xb67   :  { %v4449_v62 = vsel %vm157_vm1, %v4440_v60, %v4447_v53 }
 0xb68   :  { %v4451_v1 = vsel %vm4450_vm3, %v4449_v62, 0.0  ;;  %v4442_v4 = vpop.f32.mrf.mxu0 }
 0xb69   :  { %4452 = vst [vmem:[%s6046_s15] sm:$0xff] %v4451_v1 }
 0xb6a   :  { %v5204_v11 = vpop.f32.mrf.mxu0 }
 0xb6b   :  { %4457 = vsyncpa [#allocation3], 1 }
 0xb6c   :  { %4458 = vsyncpa [#allocation5], 1 }
 0xb6d   :  { %4459 = vsyncpa [#allocation8], 1 }
 0xb6e   :  { %4460 = vsyncpa [#allocation11], 1 }

</bundles_post_ra>
